<compile_context>
chip_gen: v5e
topology: v5e:2x2
jax: 0.10.0
libtpu: 0.0.40
codegen_flags: <defaults>
</compile_context>

<pallas_src>
import functools

import numpy as np
import jax
import jax.numpy as jnp
from jax import lax
from jax.experimental import pallas as pl
from jax.experimental.pallas import tpu as pltpu


POOL_K = 5
POOL_S = 3
C_MID = 128     # channels after the 1x1 conv
C_FEAT = 768    # channels after the 2x2 conv
P_POOL = 4      # 2x2 pooled output (CIFAR branch) -> 1x1 output of the 2x2 conv


def _as_bf16(x):
    """Dequant/cast helper: int8/f32 -> bf16 via f32 (no-op if already bf16)."""
    if x.dtype == jnp.bfloat16:
        return x
    return x.astype(jnp.float32).astype(jnp.bfloat16)


def aux_head_kernel(x_ref, pool_ref, w1_ref, s1_ref, b1_ref,
                    w2_ref, s2_ref, b2_ref, wfc_ref, sfc_ref, bfc_ref, out_ref):
    # x_ref   : (N, C*H*W)        f32   (pure reshape of NCHW)
    # pool_ref: (C*H*W, P*C)      bf16  exact 0/1 taps (1/25 folded into w1)
    # w1_ref  : (P*C, P*128)      bf16  block-diag 1x1 conv weight / 25
    # s1/b1   : (1, P*128)        f32   folded BN1, tiled over the P taps
    # w2_ref  : (P*128, 768)      int8 or bf16 (quant scale folded into s2)
    # s2/b2   : (1, 768)          f32
    # wfc_ref : (768, NC_PAD)     int8 or bf16
    # sfc/bfc : (1, NC_PAD)       f32   (sfc = dequant scale, ones if bf16)
    # out_ref : (N, NC_PAD)       f32
    #
    # NOTE: with the toy C=4 the first two matmuls are heavily lane-sparse and
    # could run as VPU broadcast-FMAs, but at production DARTS channel counts
    # (C >= 96) the MXU path below is the right one, so we keep it.
    rx = jnp.maximum(x_ref[...], 0.0).astype(jnp.bfloat16)            # ReLU once
    pooled = jnp.dot(rx, pool_ref[...],
                     preferred_element_type=jnp.float32)              # (N, P*C)

    # 1x1 conv (block-diag over the 4 pooled pixels) + folded BN + ReLU.
    h1 = jnp.dot(pooled.astype(jnp.bfloat16), w1_ref[...],
                 preferred_element_type=jnp.float32)                  # (N, P*128)
    h1 = jnp.maximum(h1 * s1_ref[...] + b1_ref[...], 0.0)

    # 2x2 conv as ONE (N, 512) x (512, 768) matmul.
    h2 = jnp.dot(h1.astype(jnp.bfloat16), _as_bf16(w2_ref[...]),
                 preferred_element_type=jnp.float32)                  # (N, 768)
    feat = jnp.maximum(h2 * s2_ref[...] + b2_ref[...], 0.0)

    # Classifier, lane-dense padded to NC_PAD columns.
    logits = jnp.dot(feat.astype(jnp.bfloat16), _as_bf16(wfc_ref[...]),
                     preferred_element_type=jnp.float32)              # (N, NC_PAD)
    out_ref[...] = logits * sfc_ref[...] + bfc_ref[...]


def fold_bn(gamma, beta, mean, var, eps=1e-5):
    scale = gamma / jnp.sqrt(var + eps)
    shift = beta - mean * scale
    return scale, shift


def _quantize_per_col_int8(w):
    """w (K, Nout) f32 -> (int8 weights, per-column scale) with w ~ w_i8*scale."""
    amax = jnp.max(jnp.abs(w), axis=0)
    scale = jnp.where(amax > 0, amax / 127.0, 1.0)
    w_i8 = jnp.clip(jnp.round(w / scale), -127, 127).astype(jnp.int8)
    return w_i8, scale.astype(jnp.float32)


def _default_weight_quant():
    # int8 halves the binding weight DMA and is MXU-native on v5e/v6e; on v7x
    # the MXU has no int path, so keep bf16 (fp8 would be the byte-saving
    # option there).  The int8 path stays *correct* everywhere because the
    # kernel dequantizes with a VPU cast.
    # TODO(synk): add an fp8(e4m3) weight path for v7x if accuracy allows.
    try:
        kind = jax.devices()[0].device_kind.lower()
    except Exception:
        return "bf16"
    if "v7" in kind or "7x" in kind:
        return "bf16"
    return "int8"


def prepare_aux_head_params(w1, w2_4d, bn1, bn2, wfc, bfc, weight_quant=None):
    """Fold BN, build block-diag/flattened weights, quantize, pad -- ONCE."""
    if weight_quant is None:
        weight_quant = _default_weight_quant()
    s1, b1 = fold_bn(*bn1)
    s2, b2 = fold_bn(*bn2)
    C = w1.shape[0]

    # Block-diagonal 1x1-conv weight with the exact 1/25 avg-pool divisor
    # folded in (keeps the bf16 pooling matrix exact 0/1).
    w1s = w1.astype(jnp.float32) / float(POOL_K * POOL_K)
    w1_big = jnp.zeros((P_POOL * C, P_POOL * C_MID), jnp.float32)
    for p in range(P_POOL):
        w1_big = w1_big.at[p * C:(p + 1) * C,
                           p * C_MID:(p + 1) * C_MID].set(w1s)
    w1_big = w1_big.astype(jnp.bfloat16)
    s1_big = jnp.tile(s1.astype(jnp.float32), P_POOL).reshape(1, P_POOL * C_MID)
    b1_big = jnp.tile(b1.astype(jnp.float32), P_POOL).reshape(1, P_POOL * C_MID)

    # 2x2 conv weight flattened to (P*128, 768), (kh,kw,c)-major rows.
    w2_flat = w2_4d.reshape(P_POOL * C_MID, C_FEAT).astype(jnp.float32)

    # Classifier, zero-padded to a lane-dense column count.
    num_classes = wfc.shape[1]
    nc_pad = max(128, ((num_classes + 127) // 128) * 128)
    wfc_f = jnp.zeros((C_FEAT, nc_pad), jnp.float32)
    wfc_f = wfc_f.at[:, :num_classes].set(wfc.astype(jnp.float32))
    bfc_pad = jnp.zeros((1, nc_pad), jnp.float32)
    bfc_pad = bfc_pad.at[0, :num_classes].set(bfc.astype(jnp.float32))

    if weight_quant == "int8":
        w2_q, qs2 = _quantize_per_col_int8(w2_flat)
        s2_eff = s2.astype(jnp.float32) * qs2          # fold dequant into BN2
        wfc_q, qsf = _quantize_per_col_int8(wfc_f)
        sfc = qsf.reshape(1, nc_pad)
    else:
        w2_q = w2_flat.astype(jnp.bfloat16)
        s2_eff = s2.astype(jnp.float32)
        wfc_q = wfc_f.astype(jnp.bfloat16)
        sfc = jnp.ones((1, nc_pad), jnp.float32)

    return (w1_big, s1_big, b1_big,
            w2_q, s2_eff.reshape(1, C_FEAT),
            b2.astype(jnp.float32).reshape(1, C_FEAT),
            wfc_q, sfc, bfc_pad)


def _build_pool_matrix(C, H, W, Ho, Wo):
    """Batch-independent AvgPool(5,3,pad=0) matrix, exact 0/1 taps.

    Shape (C*H*W, P*C): column (p, c) sums the 5x5 window p of channel c of a
    row-major-flattened NCHW sample.  The 1/25 divisor lives in w1_big.
    """
    P = Ho * Wo
    pm = np.zeros((C * H * W, P * C), np.float32)
    for c in range(C):
        for oh in range(Ho):
            for ow in range(Wo):
                p = oh * Wo + ow
                for kh in range(POOL_K):
                    for kw in range(POOL_K):
                        h = oh * POOL_S + kh
                        w = ow * POOL_S + kw
                        pm[c * H * W + h * W + w, p * C + c] = 1.0
    return pm


@functools.partial(jax.jit, static_argnames=("num_classes",))
def auxiliary_head_forward(x_nchw, params, *, num_classes):
    w1_big, s1, b1, w2, s2, b2, wfc, sfc, bfc = params
    N, C, H, W = x_nchw.shape
    Ho = (H - POOL_K) // POOL_S + 1
    Wo = (W - POOL_K) // POOL_S + 1
    assert Ho == 2 and Wo == 2, "Linear(768, nc) requires 1x1 output of the 2x2 conv"
    assert Ho * Wo == P_POOL
    nc_pad = wfc.shape[1]

    # Trace-time constants / pure reshape (no transpose launch).
    pool_mat = jnp.asarray(_build_pool_matrix(C, H, W, Ho, Wo), jnp.bfloat16)
    x_flat = x_nchw.reshape(N, C * H * W).astype(jnp.float32)

    inputs = (x_flat, pool_mat, w1_big, s1, b1, w2, s2, b2, wfc, sfc, bfc)

    flops = 2 * N * (C * H * W * P_POOL * C          # pooling matmul
                     + P_POOL * C * P_POOL * C_MID   # block-diag 1x1 conv
                     + P_POOL * C_MID * C_FEAT       # 2x2 conv (one matmul)
                     + C_FEAT * nc_pad)              # classifier
    bytes_accessed = (sum(int(a.size) * a.dtype.itemsize for a in inputs)
                      + N * nc_pad * 4)

    out_pad = pl.pallas_call(
        aux_head_kernel,
        out_shape=jax.ShapeDtypeStruct((N, nc_pad), jnp.float32),
        in_specs=[pl.BlockSpec(memory_space=pltpu.MemorySpace.VMEM)] * len(inputs),
        out_specs=pl.BlockSpec(memory_space=pltpu.MemorySpace.VMEM),
        compiler_params=pltpu.CompilerParams(
            # Let XLA fuse the NCHW reshape into this call's input DMA instead
            # of launching it as a separate tiny kernel.
            allow_input_fusion=[True] + [False] * (len(inputs) - 1)),
        cost_estimate=pl.CostEstimate(flops=flops, transcendentals=0,
                                      bytes_accessed=bytes_accessed),
    )(*inputs)
    # For large N, add a batch grid with dimension_semantics=("parallel",) to
    # engage both v7x TensorCores; at N=2 it would only add ~0.35us/step.
    return out_pad[:, :num_classes]


def reference_forward(x_nchw, w1, w2_4d, bn1, bn2, wfc, bfc):
    """Pure JAX f32 reference (independent of the kernel), eval-mode BN."""
    x = jnp.transpose(x_nchw, (0, 2, 3, 1))                      # NHWC
    x = jnp.maximum(x, 0.0)
    pooled = lax.reduce_window(x, 0.0, lax.add,
                               (1, POOL_K, POOL_K, 1),
                               (1, POOL_S, POOL_S, 1), "VALID") / float(POOL_K * POOL_K)
    C = x.shape[-1]
    s1, b1 = fold_bn(*bn1)
    s2, b2 = fold_bn(*bn2)
    h1 = lax.conv_general_dilated(pooled, w1.reshape(1, 1, C, 128), (1, 1), "VALID",
                                  dimension_numbers=("NHWC", "HWIO", "NHWC"),
                                  precision=lax.Precision.HIGHEST)
    h1 = jnp.maximum(h1 * s1.reshape(1, 1, 1, 128) + b1.reshape(1, 1, 1, 128), 0.0)
    h2 = lax.conv_general_dilated(h1, w2_4d, (1, 1), "VALID",
                                  dimension_numbers=("NHWC", "HWIO", "NHWC"),
                                  precision=lax.Precision.HIGHEST)
    h2 = jnp.maximum(h2 * s2.reshape(1, 1, 1, 768) + b2.reshape(1, 1, 1, 768), 0.0)
    feat = h2.reshape(h2.shape[0], -1)                           # (N, 768)
    return jnp.dot(feat, wfc, precision=lax.Precision.HIGHEST) + bfc


if __name__ == "__main__":
    N, C, H, W = 2, 4, 8, 8        # DARTS CIFAR aux-head input size
    NUM_CLASSES = 10

    key = jax.random.PRNGKey(0)
    ks = jax.random.split(key, 13)

    x = jax.random.normal(ks[0], (N, C, H, W), jnp.float32)

    # Conv / BN / Linear parameters (deterministic synthetic init).
    w1 = jax.random.normal(ks[1], (C, 128), jnp.float32) * 0.1              # 1x1 conv
    w2_4d = jax.random.normal(ks[2], (2, 2, 128, 768), jnp.float32) * 0.05  # 2x2 conv (HWIO)

    bn1 = (jax.random.normal(ks[3], (128,), jnp.float32) * 0.1 + 1.0,       # gamma
           jax.random.normal(ks[4], (128,), jnp.float32) * 0.1,             # beta
           jax.random.normal(ks[5], (128,), jnp.float32) * 0.1,             # running_mean
           jax.random.uniform(ks[6], (128,), jnp.float32, minval=0.5, maxval=1.5))  # running_var
    bn2 = (jax.random.normal(ks[7], (768,), jnp.float32) * 0.1 + 1.0,
           jax.random.normal(ks[8], (768,), jnp.float32) * 0.1,
           jax.random.normal(ks[9], (768,), jnp.float32) * 0.1,
           jax.random.uniform(ks[10], (768,), jnp.float32, minval=0.5, maxval=1.5))

    wfc = jax.random.normal(ks[11], (768, NUM_CLASSES), jnp.float32) * 0.05
    bfc = jax.random.normal(ks[12], (NUM_CLASSES,), jnp.float32) * 0.1

    # One-time parameter preparation (BN fold, block-diag/flatten, quantize, pad).
    params = prepare_aux_head_params(w1, w2_4d, bn1, bn2, wfc, bfc)

    out = auxiliary_head_forward(x, params, num_classes=NUM_CLASSES)
    out = jax.block_until_ready(out)

    ref = jax.block_until_ready(reference_forward(x, w1, w2_4d, bn1, bn2, wfc, bfc))
    # bf16 activations (+ optional int8 weights) vs a HIGHEST-precision f32
    # reference -> quantization-appropriate tolerance.
    tol = 3e-2 if params[3].dtype == jnp.int8 else 2e-2
    if not jnp.allclose(out, ref, rtol=tol, atol=tol):
        raise AssertionError("Pallas kernel output does not match JAX reference")

    print("KERNEL_OK")
</pallas_src>

<mosaic_0001>
module attributes {stable_mosaic.version = 11 : i64} {
  func.func @aux_head_kernel(%arg0: memref<2x256xf32, #tpu.memory_space<vmem>>, %arg1: memref<256x16xbf16, #tpu.memory_space<vmem>>, %arg2: memref<16x512xbf16, #tpu.memory_space<vmem>>, %arg3: memref<1x512xf32, #tpu.memory_space<vmem>>, %arg4: memref<1x512xf32, #tpu.memory_space<vmem>>, %arg5: memref<512x768xi8, #tpu.memory_space<vmem>>, %arg6: memref<1x768xf32, #tpu.memory_space<vmem>>, %arg7: memref<1x768xf32, #tpu.memory_space<vmem>>, %arg8: memref<768x128xi8, #tpu.memory_space<vmem>>, %arg9: memref<1x128xf32, #tpu.memory_space<vmem>>, %arg10: memref<1x128xf32, #tpu.memory_space<vmem>>, %arg11: memref<2x128xf32, #tpu.memory_space<vmem>>) attributes {dimension_semantics = [], scalar_prefetch = 0 : i64, scratch_operands = 0 : i64, tpu.core_type = #tpu.core_type<tc>} {
    %c0 = arith.constant 0 : index
    %c0_0 = arith.constant 0 : index
    %0 = vector.load %arg0[%c0, %c0_0] : memref<2x256xf32, #tpu.memory_space<vmem>>, vector<2x256xf32>
    %cst = arith.constant 0.000000e+00 : f32
    %1 = vector.broadcast %cst : f32 to vector<2x256xf32>
    %2 = arith.maximumf %0, %1 : vector<2x256xf32>
    %3 = arith.truncf %2 : vector<2x256xf32> to vector<2x256xbf16>
    %c0_1 = arith.constant 0 : index
    %c0_2 = arith.constant 0 : index
    %4 = vector.load %arg1[%c0_1, %c0_2] : memref<256x16xbf16, #tpu.memory_space<vmem>>, vector<256x16xbf16>
    %cst_3 = arith.constant dense<0.000000e+00> : vector<2x16xf32>
    %5 = tpu.matmul %3, %4, %cst_3 {dimension_numbers = #tpu.dot_dimension_numbers<[1], [0], [0], [1], [0, 0, 1, 1], [], []>} : vector<2x256xbf16>, vector<256x16xbf16>, vector<2x16xf32> -> vector<2x16xf32>
    %6 = arith.truncf %5 : vector<2x16xf32> to vector<2x16xbf16>
    %c0_4 = arith.constant 0 : index
    %c0_5 = arith.constant 0 : index
    %7 = vector.load %arg2[%c0_4, %c0_5] : memref<16x512xbf16, #tpu.memory_space<vmem>>, vector<16x512xbf16>
    %cst_6 = arith.constant dense<0.000000e+00> : vector<2x512xf32>
    %8 = tpu.matmul %6, %7, %cst_6 {dimension_numbers = #tpu.dot_dimension_numbers<[1], [0], [0], [1], [0, 0, 1, 1], [], []>} : vector<2x16xbf16>, vector<16x512xbf16>, vector<2x512xf32> -> vector<2x512xf32>
    %c0_7 = arith.constant 0 : index
    %c0_8 = arith.constant 0 : index
    %9 = vector.load %arg3[%c0_7, %c0_8] : memref<1x512xf32, #tpu.memory_space<vmem>>, vector<1x512xf32>
    %10 = vector.broadcast %9 : vector<1x512xf32> to vector<2x512xf32>
    %11 = arith.mulf %8, %10 : vector<2x512xf32>
    %c0_9 = arith.constant 0 : index
    %c0_10 = arith.constant 0 : index
    %12 = vector.load %arg4[%c0_9, %c0_10] : memref<1x512xf32, #tpu.memory_space<vmem>>, vector<1x512xf32>
    %13 = vector.broadcast %12 : vector<1x512xf32> to vector<2x512xf32>
    %14 = arith.addf %11, %13 : vector<2x512xf32>
    %cst_11 = arith.constant 0.000000e+00 : f32
    %15 = vector.broadcast %cst_11 : f32 to vector<2x512xf32>
    %16 = arith.maximumf %14, %15 : vector<2x512xf32>
    %17 = arith.truncf %16 : vector<2x512xf32> to vector<2x512xbf16>
    %c0_12 = arith.constant 0 : index
    %c0_13 = arith.constant 0 : index
    %18 = vector.load %arg5[%c0_12, %c0_13] : memref<512x768xi8, #tpu.memory_space<vmem>>, vector<512x768xi8>
    %19 = arith.sitofp %18 : vector<512x768xi8> to vector<512x768xf32>
    %20 = arith.truncf %19 : vector<512x768xf32> to vector<512x768xbf16>
    %cst_14 = arith.constant dense<0.000000e+00> : vector<2x768xf32>
    %21 = tpu.matmul %17, %20, %cst_14 {dimension_numbers = #tpu.dot_dimension_numbers<[1], [0], [0], [1], [0, 0, 1, 1], [], []>} : vector<2x512xbf16>, vector<512x768xbf16>, vector<2x768xf32> -> vector<2x768xf32>
    %c0_15 = arith.constant 0 : index
    %c0_16 = arith.constant 0 : index
    %22 = vector.load %arg6[%c0_15, %c0_16] : memref<1x768xf32, #tpu.memory_space<vmem>>, vector<1x768xf32>
    %23 = vector.broadcast %22 : vector<1x768xf32> to vector<2x768xf32>
    %24 = arith.mulf %21, %23 : vector<2x768xf32>
    %c0_17 = arith.constant 0 : index
    %c0_18 = arith.constant 0 : index
    %25 = vector.load %arg7[%c0_17, %c0_18] : memref<1x768xf32, #tpu.memory_space<vmem>>, vector<1x768xf32>
    %26 = vector.broadcast %25 : vector<1x768xf32> to vector<2x768xf32>
    %27 = arith.addf %24, %26 : vector<2x768xf32>
    %cst_19 = arith.constant 0.000000e+00 : f32
    %28 = vector.broadcast %cst_19 : f32 to vector<2x768xf32>
    %29 = arith.maximumf %27, %28 : vector<2x768xf32>
    %30 = arith.truncf %29 : vector<2x768xf32> to vector<2x768xbf16>
    %c0_20 = arith.constant 0 : index
    %c0_21 = arith.constant 0 : index
    %31 = vector.load %arg8[%c0_20, %c0_21] : memref<768x128xi8, #tpu.memory_space<vmem>>, vector<768x128xi8>
    %32 = arith.sitofp %31 : vector<768x128xi8> to vector<768x128xf32>
    %33 = arith.truncf %32 : vector<768x128xf32> to vector<768x128xbf16>
    %cst_22 = arith.constant dense<0.000000e+00> : vector<2x128xf32>
    %34 = tpu.matmul %30, %33, %cst_22 {dimension_numbers = #tpu.dot_dimension_numbers<[1], [0], [0], [1], [0, 0, 1, 1], [], []>} : vector<2x768xbf16>, vector<768x128xbf16>, vector<2x128xf32> -> vector<2x128xf32>
    %c0_23 = arith.constant 0 : index
    %c0_24 = arith.constant 0 : index
    %35 = vector.load %arg9[%c0_23, %c0_24] : memref<1x128xf32, #tpu.memory_space<vmem>>, vector<1x128xf32>
    %36 = vector.broadcast %35 : vector<1x128xf32> to vector<2x128xf32>
    %37 = arith.mulf %34, %36 : vector<2x128xf32>
    %c0_25 = arith.constant 0 : index
    %c0_26 = arith.constant 0 : index
    %38 = vector.load %arg10[%c0_25, %c0_26] : memref<1x128xf32, #tpu.memory_space<vmem>>, vector<1x128xf32>
    %39 = vector.broadcast %38 : vector<1x128xf32> to vector<2x128xf32>
    %40 = arith.addf %37, %39 : vector<2x128xf32>
    %c0_27 = arith.constant 0 : index
    %c0_28 = arith.constant 0 : index
    %41 = vector.load %arg11[%c0_27, %c0_28] : memref<2x128xf32, #tpu.memory_space<vmem>>, vector<2x128xf32>
    tpu.vector_store %arg11[%c0_27, %c0_28], %40 {strides = array<i32>} : memref<2x128xf32, #tpu.memory_space<vmem>>, vector<2x128xf32>,
    return
  }
}

</mosaic_0001>

<bundles_post_ra>
// kernel: auxiliary_head_forward.1
= control target key start
LH: loop header
LB: loop body
LE: loop exit
PB: predicated region body
PF: predicated region fallthrough
CT: control target
= control target key end

     0   :  { %16 = vsyncpa [#allocation3], 0  ;;  %s2959_s0 = inlined_call_operand.vmem [shape: f32[2,256], index: 0, kind: input, shape index: {}]   ;;  %s2960_s1 = inlined_call_operand.hbm [shape: bf16[256,16], index: 1, kind: input, shape index: {}]   ;;  %s2961_s2 = inlined_call_operand.vmem [shape: bf16[16,512], index: 2, kind: input, shape index: {}]   ;;  %s2962_s3 = inlined_call_operand.vmem [shape: f32[1,512], index: 3, kind: input, shape index: {}]   ;;  %s2963_s4 = inlined_call_operand.vmem [shape: f32[1,512], index: 4, kind: input, shape index: {}]   ;;  %s2964_s5 = inlined_call_operand.hbm [shape: s8[512,768], index: 5, kind: input, shape index: {}]   ;;  %s2965_s6 = inlined_call_operand.vmem [shape: f32[1,768], index: 6, kind: input, shape index: {}]   ;;  %s2966_s7 = inlined_call_operand.vmem [shape: f32[1,768], index: 7, kind: input, shape index: {}]   ;;  %s2967_s8 = inlined_call_operand.hbm [shape: s8[768,128], index: 8, kind: input, shape index: {}]   ;;  %s2968_s9 = inlined_call_operand.vmem [shape: f32[1,128], index: 9, kind: input, shape index: {}]   ;;  %s2969_s10 = inlined_call_operand.vmem [shape: f32[1,128], index: 10, kind: input, shape index: {}]   ;;  %s2970_s11 = inlined_call_operand.hbm [shape: f32[2,128], index: 11, kind: output, shape index: {}]  }
   0x1   :  { %17 = vsyncpa [#allocation6], 0  ;;  %s44_s19 = sshll.u32 %s2964_s5, 4  ;;  %s45_s19 = int_to_ptr.hbm [resolvable:$true] %s44_s19 }
   0x2   :  { %18 = vsyncpa [#allocation4], 0  ;;  %s2377_s20 = smov [#allocation5]   ;;  %s25_s24 = sshll.u32 %s2960_s1, 4  ;;  %s26_s24 = int_to_ptr.hbm [resolvable:$true] %s25_s24 }
   0x3   :  { %s46_s21 = sshll.u32 %s2377_s20, 4  ;;  %s2378_s25 = smov 768   ;;  %s47_s21 = int_to_ptr.vmem [resolvable:$true] %s46_s21 }
   0x4   :  { %s2379_s26 = smov 48   ;;  %s2380_s27 = smov [#allocation2]  }
   0x5   :  { %52 = dma.hbm_to_vmem [thread:$0]  %s45_s19, 12288, %s47_s21, [#allocation6], %s2378_s25, %s2378_s25, %s2379_s26  }
   0x6   :  { %s27_s28 = sshll.u32 %s2380_s27, 4  ;;  %s2381_s29 = smov 64   ;;  %s28_s28 = int_to_ptr.vmem [resolvable:$true] %s27_s28 }
   0x7   :  { %s2382_s30 = smov 4   ;;  %s61_s13 = sshll.u32 %s2967_s8, 4  ;;  %s62_s13 = int_to_ptr.hbm [resolvable:$true] %s61_s13 }
   0x8   :  { %33 = dma.hbm_to_vmem [thread:$0]  %s26_s24, 2048, %s28_s28, [#allocation3], %s2381_s29, %s2381_s29, %s2382_s30  }
   0x9   :  { %s2383_s14 = smov [#allocation7]   ;;  %s2384_s16 = smov 128  }
   0xa   :  { %s63_s15 = sshll.u32 %s2383_s14, 4  ;;  %s2385_s1 = smov 8   ;;  %s64_s15 = int_to_ptr.vmem [resolvable:$true] %s63_s15 }
   0xb   :  { %69 = dma.hbm_to_vmem [thread:$0]  %s62_s13, 3072, %s64_s15, [#allocation6], %s2384_s16, %s2384_s16, %s2385_s1  }
   0xc   :  { %2371 = dma.done.wait [#allocation3], 2048  }
   0xd   :  { %2372 = vsyncadd [#allocation3], 4294965248 }
   0xe   :  { %2373 = dma.done.wait [#allocation6], 15360  }
   0xf   :  { %2374 = vsyncadd [#allocation6], 4294951936  ;;  %v2250_v0 = vld [vmem:[#allocation2 + $0x38] sm:$0xff]  ;;  %v2249_v2 = vld [vmem:[#allocation2 + $0x30] sm:$0xff]  ;;  %vm276_vm0 = vcmask 130048   ;;  %s2148_s21 = sshll.u32 %s2970_s11, 4  ;;  %s2149_s21 = int_to_ptr.hbm [resolvable:$true] %s2148_s21 }
  0x10   :  { %v2258_v1 = vld [vmem:[#allocation2 + $0x78] sm:$0xff]  ;;  %225 = vmatpush.bf16.msra.mxu0 %v2250_v0  ;;  %v2257_v3 = vld [vmem:[#allocation2 + $0x70] sm:$0xff]  ;;  %v2248_v5 = vld [vmem:[#allocation2 + $0x28] sm:$0xff] }
  0x11   :  { %238 = vmatpush.bf16.msra.mxu1 %v2258_v1  ;;  %v87_v4 = vld [vmem:[%s2959_s0] sm:$0xf]  ;;  %v2256_v6 = vld [vmem:[#allocation2 + $0x68] sm:$0xff]  ;;  %v2247_v8 = vld [vmem:[#allocation2 + $0x20] sm:$0xff]  ;;  %s2386_s0 = smov [#allocation8]  }
  0x12   :  { %v88_v7 = vmax.f32 %v87_v4, 0.0  ;;  %v2255_v9 = vld [vmem:[#allocation2 + $0x60] sm:$0xff]  ;;  %v2246_v10 = vld [vmem:[#allocation2 + $0x18] sm:$0xff]  ;;  %v2245_v12 = vld [vmem:[#allocation2 + $0x10] sm:$0xff]  ;;  %s2146_s8 = sshll.u32 %s2386_s0, 4  ;;  %s2147_s8 = int_to_ptr.vmem [resolvable:$true] %s2146_s8 }
  0x13   :  { %v2254_v11 = vld [vmem:[#allocation2 + $0x58] sm:$0xff]  ;;  %v2253_v13 = vld [vmem:[#allocation2 + $0x50] sm:$0xff]  ;;  %v2244_v14 = vld [vmem:[#allocation2 + $0x8] sm:$0xff] }
  0x14   :  { %226 = vmatpush.bf16.msra.mxu0 %v2249_v2  ;;  %90 = vst [vmem:[#allocation1] ss:$4 sm:$0xff] %v88_v7  ;;  %v2252_v15 = vld [vmem:[#allocation2 + $0x48] sm:$0xff]  ;;  %v2243_v16 = vld [vmem:[#allocation2] sm:$0xff]  ;;  %v2225_v22 = vld [vmem:[%s2961_s2] sm:$0xf] }
  0x15   :  { %239 = vmatpush.bf16.msra.mxu1 %v2257_v3  ;;  %v2251_v17 = vld [vmem:[#allocation2 + $0x40] sm:$0xff]  ;;  %v2261_v23 = vld [vmem:[%s2961_s2 + $0xc] sm:$0xf0]  ;;  %v2259_v24 = vld [vmem:[%s2961_s2 + $0x4] sm:$0xf] }
  0x16   :  { %v2226_v25 = vor.u32 %v2261_v23, %v2225_v22  ;;  %v2227_v26 = vld [vmem:[%s2961_s2 + $0x10] sm:$0xf0]  ;;  %v2233_v27 = vld [vmem:[%s2961_s2 + $0x8] sm:$0xf]  ;;  %v2262_v28 = vld [vmem:[%s2961_s2 + $0x14] sm:$0xf0] }
  0x17   :  { %v2230_v29 = vor.u32 %v2259_v24, %v2227_v26  ;;  %v2234_v30 = vor.u32 %v2262_v28, %v2233_v27  ;;  %v2260_v31 = vld [vmem:[%s2961_s2 + $0xc] sm:$0xf]  ;;  %v2235_v32 = vld [vmem:[%s2961_s2 + $0x18] sm:$0xf0] }
  0x18   :  { %227 = vmatpush.bf16.msra.mxu0 %v2248_v5  ;;  %v2238_v33 = vor.u32 %v2260_v31, %v2235_v32  ;;  %v386_v34 = vld [vmem:[#allocation5 + $0x90] sm:$0xff]  ;;  %v380_v54 = vld [vmem:[#allocation5 + $0x60] sm:$0xff] }
  0x19   :  { %240 = vmatpush.bf16.msra.mxu1 %v2256_v6  ;;  %313 = vmatpush.bf16.msra.mxu2 %v2234_v30  ;;  %v410_v35 = vld [vmem:[#allocation5 + $0x150] sm:$0xff]  ;;  %v548_v36 = vunpack.c.2.s8 %v386_v34  ;;  %v554_v37 = vunpack.c.3.s8 %v386_v34  ;;  %v536_v40 = vunpack.c.0.s8 %v386_v34  ;;  %v542_v41 = vunpack.c.1.s8 %v386_v34  ;;  %v404_v59 = vld [vmem:[#allocation5 + $0x120] sm:$0xff] }
  0x1a   :  { %326 = vmatpush.bf16.msra.mxu3 %v2238_v33  ;;  %v644_v38 = vunpack.c.2.s8 %v410_v35  ;;  %v650_v39 = vunpack.c.3.s8 %v410_v35  ;;  %v632_v42 = vunpack.c.0.s8 %v410_v35  ;;  %v638_v43 = vunpack.c.1.s8 %v410_v35  ;;  %v434_v44 = vld [vmem:[#allocation5 + $0x210] sm:$0xff] }
  0x1b   :  { %v91_v18 = vld.sshfl [vmem:[#allocation1] sm:$0xff pattern:$0x73625140]  ;;  %v92_v19 = vld.sshfl [vmem:[#allocation1 + $0x8] sm:$0xff pattern:$0x73625140]  ;;  %v932_v45 = vcvt.s32.f32 %v548_v36  ;;  %v938_v46 = vcvt.s32.f32 %v554_v37  ;;  %v920_v50 = vcvt.s32.f32 %v536_v40  ;;  %v926_v51 = vcvt.s32.f32 %v542_v41 }
  0x1c   :  { %228 = vmatpush.bf16.msra.mxu0 %v2247_v8  ;;  %v95_v20 = vpack.c.bf16 %v91_v18, %v91_v18  ;;  %v96_v21 = vpack.c.bf16 %v92_v19, %v92_v19  ;;  %v1028_v47 = vcvt.s32.f32 %v644_v38  ;;  %v1034_v48 = vcvt.s32.f32 %v650_v39  ;;  %v458_v49 = vld [vmem:[#allocation5 + $0x2d0] sm:$0xff] }
  0x1d   :  { %241 = vmatpush.bf16.msra.mxu1 %v2255_v9  ;;  %v1016_v52 = vcvt.s32.f32 %v632_v42  ;;  %v1022_v53 = vcvt.s32.f32 %v638_v43  ;;  %v1274_v55 = vpack.c.bf16 %v938_v46, %v932_v45  ;;  %v740_v57 = vunpack.c.2.s8 %v434_v44  ;;  %v374_v34 = vld [vmem:[#allocation5 + $0x30] sm:$0xff] }
  0x1e   :  { %v1322_v56 = vpack.c.bf16 %v1034_v48, %v1028_v47  ;;  %v746_v58 = vunpack.c.3.s8 %v434_v44  ;;  %v1268_v60 = vpack.c.bf16 %v926_v51, %v920_v50  ;;  %v836_v62 = vunpack.c.2.s8 %v458_v49  ;;  %v398_v39 = vld [vmem:[#allocation5 + $0xf0] sm:$0xff] }
  0x1f   :  { %v1316_v61 = vpack.c.bf16 %v1022_v53, %v1016_v52  ;;  %v842_v63 = vunpack.c.3.s8 %v458_v49  ;;  %1424 = vmatpush.bf16.msrb.mxu2 %v1274_v55  ;;  %v1124_v0 = vcvt.s32.f32 %v740_v57  ;;  %v524_v2 = vunpack.c.2.s8 %v380_v54 }
  0x20   :  { %229 = vmatpush.bf16.msra.mxu0 %v2246_v10  ;;  %1437 = vmatpush.bf16.msrb.mxu3 %v1322_v56  ;;  %v1130_v1 = vcvt.s32.f32 %v746_v58  ;;  %v530_v3 = vunpack.c.3.s8 %v380_v54  ;;  %v1220_v4 = vcvt.s32.f32 %v836_v62  ;;  %v620_v6 = vunpack.c.2.s8 %v404_v59 }
  0x21   :  { %242 = vmatpush.bf16.msra.mxu1 %v2254_v11  ;;  %v1226_v5 = vcvt.s32.f32 %v842_v63  ;;  %v626_v7 = vunpack.c.3.s8 %v404_v59  ;;  %v908_v9 = vcvt.s32.f32 %v524_v2  ;;  %v728_v11 = vunpack.c.0.s8 %v434_v44 }
  0x22   :  { %v1370_v8 = vpack.c.bf16 %v1130_v1, %v1124_v0  ;;  %v914_v10 = vcvt.s32.f32 %v530_v3  ;;  %v824_v18 = vunpack.c.0.s8 %v458_v49  ;;  %v830_v19 = vunpack.c.1.s8 %v458_v49  ;;  %v422_v0 = vld [vmem:[#allocation5 + $0x1b0] sm:$0xff] }
  0x23   :  { %1425 = vmatpush.bf16.msrb.mxu2 %v1268_v60  ;;  %v512_v23 = vunpack.c.0.s8 %v380_v54  ;;  %v518_v24 = vunpack.c.1.s8 %v380_v54  ;;  %v608_v27 = vunpack.c.0.s8 %v404_v59  ;;  %v614_v28 = vunpack.c.1.s8 %v404_v59 }
  0x24   :  { %230 = vmatpush.bf16.msra.mxu0 %v2245_v12  ;;  %v1418_v12 = vpack.c.bf16 %v1226_v5, %v1220_v4  ;;  %1438 = vmatpush.bf16.msrb.mxu3 %v1316_v61  ;;  %v1214_v26 = vcvt.s32.f32 %v830_v19  ;;  %v500_v46 = vunpack.c.2.s8 %v374_v34  ;;  %v506_v47 = vunpack.c.3.s8 %v374_v34 }
  0x25   :  { %243 = vmatpush.bf16.msra.mxu1 %v2253_v13  ;;  %v1004_v13 = vcvt.s32.f32 %v620_v6  ;;  %v896_v31 = vcvt.s32.f32 %v512_v23  ;;  %v902_v32 = vcvt.s32.f32 %v518_v24  ;;  %v992_v36 = vcvt.s32.f32 %v608_v27 }
  0x26   :  { %v998_v37 = vcvt.s32.f32 %v614_v28  ;;  %v596_v50 = vunpack.c.2.s8 %v398_v39  ;;  %v602_v51 = vunpack.c.3.s8 %v398_v39  ;;  %v884_v53 = vcvt.s32.f32 %v500_v46 }
  0x27   :  { %v1256_v40 = vpack.c.bf16 %v902_v32, %v896_v31  ;;  %v890_v54 = vcvt.s32.f32 %v506_v47  ;;  %v488_v3 = vunpack.c.0.s8 %v374_v34  ;;  %v494_v4 = vunpack.c.1.s8 %v374_v34 }
  0x28   :  { %231 = vmatpush.bf16.msra.mxu0 %v2244_v14  ;;  %v1010_v14 = vcvt.s32.f32 %v626_v7  ;;  %v980_v57 = vcvt.s32.f32 %v596_v50  ;;  %v986_v58 = vcvt.s32.f32 %v602_v51  ;;  %v584_v7 = vunpack.c.0.s8 %v398_v39 }
  0x29   :  { %244 = vmatpush.bf16.msra.mxu1 %v2252_v15  ;;  %v734_v15 = vunpack.c.1.s8 %v434_v44  ;;  %v1304_v44 = vpack.c.bf16 %v998_v37, %v992_v36  ;;  %v1250_v60 = vpack.c.bf16 %v890_v54, %v884_v53  ;;  %v698_v23 = vunpack.c.3.s8 %v422_v0 }
  0x2a   :  { %v1298_v1 = vpack.c.bf16 %v986_v58, %v980_v57  ;;  %v968_v19 = vcvt.s32.f32 %v584_v7  ;;  %v680_v37 = vunpack.c.0.s8 %v422_v0  ;;  %v411_v57 = vld [vmem:[#allocation5 + $0x158] sm:$0xff]  ;;  %v440_v7 = vld [vmem:[#allocation5 + $0x240] sm:$0xff] }
  0x2b   :  { %v1118_v22 = vcvt.s32.f32 %v734_v15  ;;  %v692_v15 = vunpack.c.2.s8 %v422_v0 }
  0x2c   :  { %232 = vmatpush.bf16.msra.mxu0 %v2243_v16  ;;  %v1262_v16 = vpack.c.bf16 %v914_v10, %v908_v9  ;;  %v446_v9 = vld [vmem:[#allocation5 + $0x270] sm:$0xff] }
  0x2d   :  { %245 = vmatpush.bf16.msra.mxu1 %v2251_v17  ;;  %v1112_v17 = vcvt.s32.f32 %v728_v11  ;;  %v1076_v24 = vcvt.s32.f32 %v692_v15  ;;  %v794_v28 = vunpack.c.3.s8 %v446_v9  ;;  %v782_v50 = vunpack.c.1.s8 %v446_v9 }
  0x2e   :  { %1426 = vmatpush.bf16.msrb.mxu2 %v1262_v16  ;;  %v368_v16 = vld [vmem:[#allocation5] sm:$0xff] }
  0x2f   :  { %233 = vmatmul.bf16.vlgmr.msra.gmra.mxu0 %v95_v20  ;;  %v428_v20 = vld [vmem:[#allocation5 + $0x1e0] sm:$0xff]  ;;  %v1364_v30 = vpack.c.bf16 %v1118_v22, %v1112_v17  ;;  %v482_v32 = vunpack.c.3.s8 %v368_v16  ;;  %v1178_v34 = vcvt.s32.f32 %v794_v28  ;;  %v464_v51 = vunpack.c.0.s8 %v368_v16 }
  0x30   :  { %246 = vmatmul.bf16.vlgmr.msra.gmra.mxu1 %v96_v21  ;;  %287 = vmatpush.bf16.msrb.mxu0 %v2226_v25  ;;  %v1310_v21 = vpack.c.bf16 %v1010_v14, %v1004_v13  ;;  %v1208_v25 = vcvt.s32.f32 %v824_v18  ;;  %v716_v33 = vunpack.c.2.s8 %v428_v20  ;;  %v722_v38 = vunpack.c.3.s8 %v428_v20 }
  0x31   :  { %300 = vmatpush.bf16.msrb.mxu1 %v2230_v29  ;;  %v452_v29 = vld [vmem:[#allocation5 + $0x2a0] sm:$0xff]  ;;  %v704_v55 = vunpack.c.0.s8 %v428_v20  ;;  %v710_v59 = vunpack.c.1.s8 %v428_v20  ;;  %v872_v13 = vcvt.s32.f32 %v488_v3  ;;  %v878_v14 = vcvt.s32.f32 %v494_v4 }
  0x32   :  { %1439 = vmatpush.bf16.msrb.mxu3 %v1310_v21  ;;  %v1412_v35 = vpack.c.bf16 %v1214_v26, %v1208_v25  ;;  %v1100_v41 = vcvt.s32.f32 %v716_v33  ;;  %v812_v42 = vunpack.c.2.s8 %v452_v29  ;;  %v818_v43 = vunpack.c.3.s8 %v452_v29  ;;  %1427 = vmatpush.bf16.msrb.mxu2 %v1256_v40  ;;  %v392_v21 = vld [vmem:[#allocation5 + $0xc0] sm:$0xff] }
  0x33   :  { %v1106_v45 = vcvt.s32.f32 %v722_v38  ;;  %v1088_v61 = vcvt.s32.f32 %v704_v55  ;;  %v800_v62 = vunpack.c.0.s8 %v452_v29  ;;  %v806_v63 = vunpack.c.1.s8 %v452_v29 }
  0x34   :  { %1450 = vmatpush.bf16.msra.mxu0 %v1370_v8  ;;  %v1196_v48 = vcvt.s32.f32 %v812_v42  ;;  %v1202_v49 = vcvt.s32.f32 %v818_v43  ;;  %v1094_v2 = vcvt.s32.f32 %v710_v59  ;;  %v590_v8 = vunpack.c.1.s8 %v398_v39 }
  0x35   :  { %1463 = vmatpush.bf16.msra.mxu1 %v1418_v12  ;;  %v1358_v52 = vpack.c.bf16 %v1106_v45, %v1100_v41  ;;  %v1184_v5 = vcvt.s32.f32 %v800_v62  ;;  %v1190_v6 = vcvt.s32.f32 %v806_v63  ;;  %v1244_v22 = vpack.c.bf16 %v878_v14, %v872_v13  ;;  %v416_v62 = vld [vmem:[#allocation5 + $0x180] sm:$0xff] }
  0x36   :  { %1440 = vmatpush.bf16.msrb.mxu3 %v1304_v44  ;;  %v1406_v56 = vpack.c.bf16 %v1202_v49, %v1196_v48  ;;  %1428 = vmatpush.bf16.msrb.mxu2 %v1250_v60  ;;  %v1352_v12 = vpack.c.bf16 %v1094_v2, %v1088_v61  ;;  %v974_v20 = vcvt.s32.f32 %v590_v8  ;;  %v788_v25 = vunpack.c.2.s8 %v446_v9 }
  0x37   :  { %v1400_v18 = vpack.c.bf16 %v1190_v6, %v1184_v5  ;;  %v476_v29 = vunpack.c.2.s8 %v368_v16  ;;  %v572_v33 = vunpack.c.2.s8 %v392_v21  ;;  %v578_v36 = vunpack.c.3.s8 %v392_v21 }
  0x38   :  { %1451 = vmatpush.bf16.msra.mxu0 %v1364_v30  ;;  %v1292_v27 = vpack.c.bf16 %v974_v20, %v968_v19  ;;  %v1082_v30 = vcvt.s32.f32 %v698_v23  ;;  %v1172_v31 = vcvt.s32.f32 %v788_v25  ;;  %v866_v39 = vcvt.s32.f32 %v482_v32  ;;  %v435_v32 = vld [vmem:[#allocation5 + $0x218] sm:$0xff] }
  0x39   :  { %1464 = vmatpush.bf16.msra.mxu1 %v1412_v35  ;;  %v860_v35 = vcvt.s32.f32 %v476_v29  ;;  %v956_v40 = vcvt.s32.f32 %v572_v33  ;;  %v686_v41 = vunpack.c.1.s8 %v422_v0  ;;  %v962_v43 = vcvt.s32.f32 %v578_v36 }
  0x3a   :  { %1441 = vmatpush.bf16.msrb.mxu3 %v1298_v1  ;;  %1429 = vmatpush.bf16.msrb.mxu2 %v1244_v22  ;;  %v1346_v38 = vpack.c.bf16 %v1082_v30, %v1076_v24  ;;  %v1394_v42 = vpack.c.bf16 %v1178_v34, %v1172_v31  ;;  %v1064_v44 = vcvt.s32.f32 %v680_v37  ;;  %v776_v45 = vunpack.c.0.s8 %v446_v9  ;;  %v459_v37 = vld [vmem:[#allocation5 + $0x2d8] sm:$0xff] }
  0x3b   :  { %v1238_v48 = vpack.c.bf16 %v866_v39, %v860_v35  ;;  %v1070_v49 = vcvt.s32.f32 %v686_v41  ;;  %v1286_v53 = vpack.c.bf16 %v962_v43, %v956_v40  ;;  %v470_v55 = vunpack.c.1.s8 %v368_v16 }
  0x3c   :  { %1452 = vmatpush.bf16.msra.mxu0 %v1358_v52  ;;  %v387_v52 = vld [vmem:[#allocation5 + $0x98] sm:$0xff]  ;;  %v1160_v54 = vcvt.s32.f32 %v776_v45  ;;  %v1166_v59 = vcvt.s32.f32 %v782_v50  ;;  %v848_v60 = vcvt.s32.f32 %v464_v51  ;;  %v566_v61 = vunpack.c.1.s8 %v392_v21  ;;  %v405_v51 = vld [vmem:[#allocation5 + $0x128] sm:$0xff] }
  0x3d   :  { %1465 = vmatpush.bf16.msra.mxu1 %v1406_v56  ;;  %v560_v56 = vunpack.c.0.s8 %v392_v21  ;;  %v1340_v58 = vpack.c.bf16 %v1070_v49, %v1064_v44  ;;  %v854_v63 = vcvt.s32.f32 %v470_v55  ;;  %v549_v1 = vunpack.c.2.s8 %v387_v52 }
  0x3e   :  { %1442 = vmatpush.bf16.msrb.mxu3 %v1292_v27  ;;  %1430 = vmatpush.bf16.msrb.mxu2 %v1238_v48  ;;  %v555_v2 = vunpack.c.3.s8 %v387_v52  ;;  %v1388_v3 = vpack.c.bf16 %v1166_v59, %v1160_v54  ;;  %v950_v4 = vcvt.s32.f32 %v566_v61  ;;  %v645_v5 = vunpack.c.2.s8 %v411_v57 }
  0x3f   :  { %v944_v0 = vcvt.s32.f32 %v560_v56  ;;  %v651_v6 = vunpack.c.3.s8 %v411_v57  ;;  %v1232_v8 = vpack.c.bf16 %v854_v63, %v848_v60  ;;  %v933_v9 = vcvt.s32.f32 %v549_v1 }
  0x40   :  { %1453 = vmatpush.bf16.msra.mxu0 %v1352_v12  ;;  %v1029_v13 = vcvt.s32.f32 %v645_v5  ;;  %v674_v15 = vunpack.c.3.s8 %v416_v62  ;;  %v770_v19 = vunpack.c.3.s8 %v440_v7  ;;  %v537_v22 = vunpack.c.0.s8 %v387_v52 }
  0x41   :  { %1466 = vmatpush.bf16.msra.mxu1 %v1400_v18  ;;  %v1280_v12 = vpack.c.bf16 %v950_v4, %v944_v0  ;;  %v1035_v14 = vcvt.s32.f32 %v651_v6  ;;  %v764_v18 = vunpack.c.2.s8 %v440_v7  ;;  %v543_v23 = vunpack.c.1.s8 %v387_v52 }
  0x42   :  { %1443 = vmatpush.bf16.msrb.mxu3 %v1286_v53  ;;  %1431 = vmatpush.bf16.msrb.mxu2 %v1232_v8  ;;  %v1058_v21 = vcvt.s32.f32 %v674_v15  ;;  %v1154_v25 = vcvt.s32.f32 %v770_v19  ;;  %v639_v27 = vunpack.c.1.s8 %v411_v57  ;;  %v921_v29 = vcvt.s32.f32 %v537_v22  ;;  %v375_v22 = vld [vmem:[#allocation5 + $0x38] sm:$0xff] }
  0x43   :  { %v1323_v20 = vpack.c.bf16 %v1035_v14, %v1029_v13  ;;  %v1148_v24 = vcvt.s32.f32 %v764_v18  ;;  %v927_v30 = vcvt.s32.f32 %v543_v23  ;;  %v656_v31 = vunpack.c.0.s8 %v416_v62 }
  0x44   :  { %1454 = vmatpush.bf16.msra.mxu0 %v1346_v38  ;;  %v1023_v35 = vcvt.s32.f32 %v639_v27  ;;  %v662_v36 = vunpack.c.1.s8 %v416_v62  ;;  %v752_v40 = vunpack.c.0.s8 %v440_v7  ;;  %v758_v41 = vunpack.c.1.s8 %v440_v7 }
  0x45   :  { %1467 = vmatpush.bf16.msra.mxu1 %v1394_v42  ;;  %v1382_v33 = vpack.c.bf16 %v1154_v25, %v1148_v24  ;;  %v1269_v38 = vpack.c.bf16 %v927_v30, %v921_v29  ;;  %v1040_v39 = vcvt.s32.f32 %v656_v31  ;;  %v381_v42 = vld [vmem:[#allocation5 + $0x68] sm:$0xff]  ;;  %v741_v45 = vunpack.c.2.s8 %v435_v32  ;;  %v399_v31 = vld [vmem:[#allocation5 + $0xf8] sm:$0xff] }
  0x46   :  { %1444 = vmatpush.bf16.msrb.mxu3 %v1280_v12  ;;  %v1046_v44 = vcvt.s32.f32 %v662_v36  ;;  %v1142_v48 = vcvt.s32.f32 %v758_v41  ;;  %v837_v49 = vunpack.c.2.s8 %v459_v37  ;;  %v843_v50 = vunpack.c.3.s8 %v459_v37  ;;  %v429_v12 = vld [vmem:[#allocation5 + $0x1e8] sm:$0xff] }
  0x47   :  { %v1125_v53 = vcvt.s32.f32 %v741_v45  ;;  %v525_v55 = vunpack.c.2.s8 %v381_v42  ;;  %v531_v59 = vunpack.c.3.s8 %v381_v42  ;;  %v627_v63 = vunpack.c.3.s8 %v405_v51 }
  0x48   :  { %1455 = vmatpush.bf16.msra.mxu0 %v1340_v58  ;;  %v1328_v52 = vpack.c.bf16 %v1046_v44, %v1040_v39  ;;  %v1227_v58 = vcvt.s32.f32 %v843_v50  ;;  %v825_v6 = vunpack.c.0.s8 %v459_v37  ;;  %v831_v7 = vunpack.c.1.s8 %v459_v37 }
  0x49   :  { %1468 = vmatpush.bf16.msra.mxu1 %v1388_v3  ;;  %v909_v61 = vcvt.s32.f32 %v525_v55  ;;  %v915_v1 = vcvt.s32.f32 %v531_v59  ;;  %v735_v3 = vunpack.c.1.s8 %v435_v32  ;;  %v1011_v5 = vcvt.s32.f32 %v627_v63 }
  0x4a   :  { %v1209_v14 = vcvt.s32.f32 %v825_v6  ;;  %v1215_v15 = vcvt.s32.f32 %v831_v7  ;;  %v717_v25 = vunpack.c.2.s8 %v429_v12  ;;  %v507_v39 = vunpack.c.3.s8 %v375_v22 }
  0x4b   :  { %v1263_v8 = vpack.c.bf16 %v915_v1, %v909_v61  ;;  %v495_v61 = vunpack.c.1.s8 %v375_v22  ;;  %v591_v63 = vunpack.c.1.s8 %v399_v31  ;;  %v447_v1 = vld [vmem:[#allocation5 + $0x278] sm:$0xff] }
  0x4c   :  { %v1413_v23 = vpack.c.bf16 %v1215_v15, %v1209_v14  ;;  %v891_v45 = vcvt.s32.f32 %v507_v39 }
  0x4d   :  { %1469 = vmatpush.bf16.msra.mxu1 %v1382_v33  ;;  %v1101_v33 = vcvt.s32.f32 %v717_v25 }
  0xac   :  { %v234_v10 = vpop.f32.mrf.mxu0 }
  0xad   :  { %v247_v11 = vpop.f32.mrf.mxu1 }
  0xae   :  { %v248_v17 = vadd.f32 %v247_v11, %v234_v10  ;;  %v939_v10 = vcvt.s32.f32 %v555_v2  ;;  %v668_v11 = vunpack.c.2.s8 %v416_v62  ;;  %v621_v62 = vunpack.c.2.s8 %v405_v51 }
  0xaf   :  { %v729_v2 = vunpack.c.0.s8 %v435_v32 }
  0xb0   :  { %v251_v26 = vpack.c.bf16 %v248_v17, %v248_v17  ;;  %v1275_v16 = vpack.c.bf16 %v939_v10, %v933_v9  ;;  %v1052_v17 = vcvt.s32.f32 %v668_v11  ;;  %v1005_v4 = vcvt.s32.f32 %v621_v62 }
  0xb1   :  { %v1113_v9 = vcvt.s32.f32 %v729_v2  ;;  %v1119_v10 = vcvt.s32.f32 %v735_v3  ;;  %v513_v11 = vunpack.c.0.s8 %v381_v42  ;;  %v585_v62 = vunpack.c.0.s8 %v399_v31 }
  0xb2   :  { %2239 = vmatmul.msk.bf16.vlgmr.msrb.gmra.mxu0 %vm276_vm0, %v251_v26  ;;  %2240 = vmatmul.msk.bf16.vlgmr.msrb.gmra.mxu1 %vm276_vm0, %v251_v26  ;;  %v1334_v28 = vpack.c.bf16 %v1058_v21, %v1052_v17  ;;  %v1311_v13 = vpack.c.bf16 %v1011_v5, %v1005_v4  ;;  %v453_v17 = vld [vmem:[#allocation5 + $0x2a8] sm:$0xff]  ;;  %v615_v21 = vunpack.c.1.s8 %v405_v51  ;;  %v879_v3 = vcvt.s32.f32 %v495_v61 }
  0xb3   :  { %2241 = vmatmul.msk.bf16.vlgmr.msra.gmra.mxu2 %vm276_vm0, %v251_v26  ;;  %2242 = vmatmul.msk.bf16.vlgmr.msra.gmra.mxu3 %vm276_vm0, %v251_v26  ;;  %v633_v26 = vunpack.c.0.s8 %v411_v57  ;;  %v1221_v57 = vcvt.s32.f32 %v837_v49  ;;  %v1365_v18 = vpack.c.bf16 %v1119_v10, %v1113_v9  ;;  %v897_v19 = vcvt.s32.f32 %v513_v11  ;;  %v369_v10 = vld [vmem:[#allocation5 + $0x8] sm:$0xff]  ;;  %v2490_v11 = vld [vmem:[%s2962_s3] sm:$0xf] }
  0xb4   :  { %v236_v46 = vpop.f32.mrf.mxu0  ;;  %1476 = vmatpush.bf16.msra.mxu2 %v1275_v16  ;;  %1489 = vmatpush.bf16.msra.mxu3 %v1323_v20  ;;  %v519_v16 = vunpack.c.1.s8 %v381_v42  ;;  %v609_v20 = vunpack.c.0.s8 %v405_v51  ;;  %v813_v29 = vunpack.c.2.s8 %v453_v17  ;;  %v819_v30 = vunpack.c.3.s8 %v453_v17  ;;  %v441_v61 = vld [vmem:[#allocation5 + $0x248] sm:$0xff] }
  0xb5   :  { %v249_v47 = vpop.f32.mrf.mxu1  ;;  %v1017_v34 = vcvt.s32.f32 %v633_v26  ;;  %1456 = vmatpush.bf16.msra.mxu0 %v1334_v28  ;;  %v747_v46 = vunpack.c.3.s8 %v435_v32  ;;  %v1419_v0 = vpack.c.bf16 %v1227_v58, %v1221_v57  ;;  %v723_v26 = vunpack.c.3.s8 %v429_v12 }
  0xb6   :  { %v1136_v47 = vcvt.s32.f32 %v752_v40  ;;  %v903_v24 = vcvt.s32.f32 %v519_v16  ;;  %v993_v27 = vcvt.s32.f32 %v609_v20  ;;  %v999_v28 = vcvt.s32.f32 %v615_v21  ;;  %v393_v16 = vld [vmem:[#allocation5 + $0xc8] sm:$0xff]  ;;  %v2497_v21 = vld [vmem:[%s2963_s4] sm:$0xf] }
  0xb7   :  { %v1317_v43 = vpack.c.bf16 %v1023_v35, %v1017_v34  ;;  %v1131_v54 = vcvt.s32.f32 %v747_v46  ;;  %v1107_v34 = vcvt.s32.f32 %v723_v26  ;;  %v501_v35 = vunpack.c.2.s8 %v375_v22 }
  0xb8   :  { %1477 = vmatpush.bf16.msra.mxu2 %v1269_v38  ;;  %v1376_v56 = vpack.c.bf16 %v1142_v48, %v1136_v47  ;;  %v1257_v32 = vpack.c.bf16 %v903_v24, %v897_v19  ;;  %v1305_v36 = vpack.c.bf16 %v999_v28, %v993_v27  ;;  %v1197_v37 = vcvt.s32.f32 %v813_v29 }
  0xb9   :  { %1490 = vmatpush.bf16.msra.mxu3 %v1317_v43  ;;  %1457 = vmatpush.bf16.msra.mxu0 %v1328_v52  ;;  %v1371_v60 = vpack.c.bf16 %v1131_v54, %v1125_v53  ;;  %v1203_v38 = vcvt.s32.f32 %v819_v30  ;;  %v1359_v40 = vpack.c.bf16 %v1107_v34, %v1101_v33  ;;  %v885_v41 = vcvt.s32.f32 %v501_v35 }
  0xba   :  { %1470 = vmatpush.bf16.msra.mxu1 %v1376_v56  ;;  %v597_v42 = vunpack.c.2.s8 %v399_v31  ;;  %v603_v43 = vunpack.c.3.s8 %v399_v31  ;;  %v705_v46 = vunpack.c.0.s8 %v429_v12  ;;  %v711_v47 = vunpack.c.1.s8 %v429_v12 }
  0xbb   :  { %v1407_v44 = vpack.c.bf16 %v1203_v38, %v1197_v37  ;;  %v801_v50 = vunpack.c.0.s8 %v453_v17  ;;  %v807_v51 = vunpack.c.1.s8 %v453_v17  ;;  %v1251_v52 = vpack.c.bf16 %v891_v45, %v885_v41 }
  0xbc   :  { %1478 = vmatpush.bf16.msra.mxu2 %v1263_v8  ;;  %v981_v48 = vcvt.s32.f32 %v597_v42  ;;  %v987_v49 = vcvt.s32.f32 %v603_v43  ;;  %v1089_v53 = vcvt.s32.f32 %v705_v46  ;;  %v1095_v54 = vcvt.s32.f32 %v711_v47  ;;  %v388_v46 = vld [vmem:[#allocation5 + $0xa0] sm:$0xff] }
  0xbd   :  { %1502 = vmatpush.bf16.msrb.mxu0 %v1371_v60  ;;  %1491 = vmatpush.bf16.msra.mxu3 %v1311_v13  ;;  %v1185_v56 = vcvt.s32.f32 %v801_v50  ;;  %v1191_v57 = vcvt.s32.f32 %v807_v51  ;;  %v489_v60 = vunpack.c.0.s8 %v375_v22  ;;  %v969_v4 = vcvt.s32.f32 %v585_v62  ;;  %v412_v51 = vld [vmem:[#allocation5 + $0x160] sm:$0xff] }
  0xbe   :  { %1515 = vmatpush.bf16.msrb.mxu1 %v1419_v0  ;;  %v1299_v55 = vpack.c.bf16 %v987_v49, %v981_v48  ;;  %v1353_v58 = vpack.c.bf16 %v1095_v54, %v1089_v53  ;;  %v423_v0 = vld [vmem:[#allocation5 + $0x1b8] sm:$0xff]  ;;  %v975_v5 = vcvt.s32.f32 %v591_v63  ;;  %v789_v8 = vunpack.c.2.s8 %v447_v1 }
  0xbf   :  { %v1401_v59 = vpack.c.bf16 %v1191_v57, %v1185_v56  ;;  %v873_v2 = vcvt.s32.f32 %v489_v60  ;;  %v693_v6 = vunpack.c.2.s8 %v423_v0  ;;  %v699_v7 = vunpack.c.3.s8 %v423_v0  ;;  %v417_v56 = vld [vmem:[#allocation5 + $0x188] sm:$0xff] }
  0xc0   :  { %1479 = vmatpush.bf16.msra.mxu2 %v1257_v32  ;;  %v795_v9 = vunpack.c.3.s8 %v447_v1  ;;  %v1293_v13 = vpack.c.bf16 %v975_v5, %v969_v4  ;;  %v477_v14 = vunpack.c.2.s8 %v369_v10  ;;  %v483_v15 = vunpack.c.3.s8 %v369_v10 }
  0xc1   :  { %1503 = vmatpush.bf16.msrb.mxu0 %v1365_v18  ;;  %1492 = vmatpush.bf16.msra.mxu3 %v1305_v36  ;;  %v1245_v12 = vpack.c.bf16 %v879_v3, %v873_v2  ;;  %v334_v17 = vperm.slane %v2490_v11, 0  ;;  %v335_v18 = vperm.slane %v2490_v11, 1  ;;  %v1077_v19 = vcvt.s32.f32 %v693_v6 }
  0xc2   :  { %1516 = vmatpush.bf16.msrb.mxu1 %v1413_v23  ;;  %v1083_v20 = vcvt.s32.f32 %v699_v7  ;;  %v1173_v22 = vcvt.s32.f32 %v789_v8  ;;  %v1179_v23 = vcvt.s32.f32 %v795_v9  ;;  %v861_v24 = vcvt.s32.f32 %v477_v14 }
  0xc3   :  { %v867_v25 = vcvt.s32.f32 %v483_v15  ;;  %v348_v26 = vperm.slane %v2497_v21, 0  ;;  %v349_v27 = vperm.slane %v2497_v21, 1  ;;  %v573_v29 = vunpack.c.2.s8 %v393_v16 }
  0xc4   :  { %1480 = vmatpush.bf16.msra.mxu2 %v1251_v52  ;;  %v1347_v28 = vpack.c.bf16 %v1083_v20, %v1077_v19  ;;  %v1395_v30 = vpack.c.bf16 %v1179_v23, %v1173_v22  ;;  %v579_v32 = vunpack.c.3.s8 %v393_v16  ;;  %v681_v33 = vunpack.c.0.s8 %v423_v0 }
  0xc5   :  { %1504 = vmatpush.bf16.msrb.mxu0 %v1359_v40  ;;  %1493 = vmatpush.bf16.msra.mxu3 %v1299_v55  ;;  %v1239_v31 = vpack.c.bf16 %v867_v25, %v861_v24  ;;  %v957_v34 = vcvt.s32.f32 %v573_v29  ;;  %v687_v35 = vunpack.c.1.s8 %v423_v0  ;;  %v777_v36 = vunpack.c.0.s8 %v447_v1 }
  0xc6   :  { %1517 = vmatpush.bf16.msrb.mxu1 %v1407_v44  ;;  %v783_v37 = vunpack.c.1.s8 %v447_v1  ;;  %v963_v38 = vcvt.s32.f32 %v579_v32  ;;  %v1065_v39 = vcvt.s32.f32 %v681_v33  ;;  %v465_v40 = vunpack.c.0.s8 %v369_v10  ;;  %v436_v32 = vld [vmem:[#allocation5 + $0x220] sm:$0xff] }
  0xc7   :  { %v471_v41 = vunpack.c.1.s8 %v369_v10  ;;  %v336_v42 = vperm.slane %v2490_v11, 2  ;;  %v337_v43 = vperm.slane %v2490_v11, 3  ;;  %v1071_v44 = vcvt.s32.f32 %v687_v35 }
  0xc8   :  { %1481 = vmatpush.bf16.msra.mxu2 %v1245_v12  ;;  %v1161_v45 = vcvt.s32.f32 %v777_v36  ;;  %v1287_v47 = vpack.c.bf16 %v963_v38, %v957_v34  ;;  %v1167_v48 = vcvt.s32.f32 %v783_v37  ;;  %v849_v49 = vcvt.s32.f32 %v465_v40  ;;  %v460_v37 = vld [vmem:[#allocation5 + $0x2e0] sm:$0xff] }
  0xc9   :  { %1505 = vmatpush.bf16.msrb.mxu0 %v1353_v58  ;;  %1494 = vmatpush.bf16.msra.mxu3 %v1293_v13  ;;  %v855_v50 = vcvt.s32.f32 %v471_v41  ;;  %v350_v52 = vperm.slane %v2497_v21, 2  ;;  %v351_v53 = vperm.slane %v2497_v21, 3  ;;  %v1341_v54 = vpack.c.bf16 %v1071_v44, %v1065_v39  ;;  %v382_v44 = vld [vmem:[#allocation5 + $0x70] sm:$0xff] }
  0xca   :  { %1518 = vmatpush.bf16.msrb.mxu1 %v1401_v59  ;;  %v561_v55 = vunpack.c.0.s8 %v393_v16  ;;  %v1389_v57 = vpack.c.bf16 %v1167_v48, %v1161_v45  ;;  %v567_v59 = vunpack.c.1.s8 %v393_v16  ;;  %v550_v60 = vunpack.c.2.s8 %v388_v46 }
  0xcb   :  { %v1233_v58 = vpack.c.bf16 %v855_v50, %v849_v49  ;;  %v556_v63 = vunpack.c.3.s8 %v388_v46  ;;  %v646_v0 = vunpack.c.2.s8 %v412_v51  ;;  %v652_v1 = vunpack.c.3.s8 %v412_v51  ;;  %v406_v49 = vld [vmem:[#allocation5 + $0x130] sm:$0xff] }
  0xcc   :  { %1482 = vmatpush.bf16.msra.mxu2 %v1239_v31  ;;  %v945_v62 = vcvt.s32.f32 %v561_v55  ;;  %v951_v2 = vcvt.s32.f32 %v567_v59  ;;  %v2505_v3 = vcvt.s32.f32 %v550_v60  ;;  %v669_v4 = vunpack.c.2.s8 %v417_v56 }
  0xcd   :  { %1506 = vmatpush.bf16.msrb.mxu0 %v1347_v28  ;;  %1495 = vmatpush.bf16.msra.mxu3 %v1287_v47  ;;  %v675_v5 = vunpack.c.3.s8 %v417_v56  ;;  %v2507_v6 = vcvt.s32.f32 %v556_v63  ;;  %v2509_v7 = vcvt.s32.f32 %v646_v0  ;;  %v2511_v8 = vcvt.s32.f32 %v652_v1 }
  0xce   :  { %1519 = vmatpush.bf16.msrb.mxu1 %v1395_v30  ;;  %v765_v9 = vunpack.c.2.s8 %v441_v61  ;;  %v1281_v10 = vpack.c.bf16 %v951_v2, %v945_v62  ;;  %v1053_v12 = vcvt.s32.f32 %v669_v4  ;;  %v771_v14 = vunpack.c.3.s8 %v441_v61 }
  0xcf   :  { %v1059_v13 = vcvt.s32.f32 %v675_v5  ;;  %v1276_v15 = vpack.c.bf16 %v2507_v6, %v2505_v3  ;;  %v1324_v16 = vpack.c.bf16 %v2511_v8, %v2509_v7  ;;  %v538_v20 = vunpack.c.0.s8 %v388_v46  ;;  %v394_v8 = vld [vmem:[#allocation5 + $0xd0] sm:$0xff] }
  0xd0   :  { %1483 = vmatpush.bf16.msra.mxu2 %v1233_v58  ;;  %v1149_v19 = vcvt.s32.f32 %v765_v9  ;;  %v1155_v23 = vcvt.s32.f32 %v771_v14  ;;  %v544_v24 = vunpack.c.1.s8 %v388_v46  ;;  %v634_v25 = vunpack.c.0.s8 %v412_v51 }
  0xd1   :  { %1507 = vmatpush.bf16.msrb.mxu0 %v1341_v54  ;;  %1496 = vmatpush.bf16.msra.mxu3 %v1281_v10  ;;  %v1335_v22 = vpack.c.bf16 %v1059_v13, %v1053_v12  ;;  %v2517_v28 = vcvt.s32.f32 %v538_v20  ;;  %v640_v29 = vunpack.c.1.s8 %v412_v51  ;;  %v657_v30 = vunpack.c.0.s8 %v417_v56 }
  0xd2   :  { %1520 = vmatpush.bf16.msrb.mxu1 %v1389_v57  ;;  %v663_v31 = vunpack.c.1.s8 %v417_v56  ;;  %v1383_v33 = vpack.c.bf16 %v1155_v23, %v1149_v19  ;;  %v2519_v34 = vcvt.s32.f32 %v544_v24  ;;  %v2521_v35 = vcvt.s32.f32 %v634_v25 }
  0xd3   :  { %v753_v36 = vunpack.c.0.s8 %v441_v61  ;;  %v2523_v38 = vcvt.s32.f32 %v640_v29  ;;  %v1041_v39 = vcvt.s32.f32 %v657_v30  ;;  %v759_v41 = vunpack.c.1.s8 %v441_v61  ;;  %v430_v29 = vld [vmem:[#allocation5 + $0x1f0] sm:$0xff] }
  0xd4   :  { %v1047_v40 = vcvt.s32.f32 %v663_v31  ;;  %v1270_v45 = vpack.c.bf16 %v2519_v34, %v2517_v28  ;;  %v742_v47 = vunpack.c.2.s8 %v436_v32  ;;  %v748_v48 = vunpack.c.3.s8 %v436_v32 }
  0xd5   :  { %1508 = vmatpush.bf16.msrb.mxu0 %v1335_v22  ;;  %v1137_v46 = vcvt.s32.f32 %v753_v36  ;;  %v1318_v50 = vpack.c.bf16 %v2523_v38, %v2521_v35  ;;  %v1143_v54 = vcvt.s32.f32 %v759_v41  ;;  %v838_v55 = vunpack.c.2.s8 %v460_v37  ;;  %v454_v36 = vld [vmem:[#allocation5 + $0x2b0] sm:$0xff] }
  0xd6   :  { %1521 = vmatpush.bf16.msrb.mxu1 %v1383_v33  ;;  %v1329_v51 = vpack.c.bf16 %v1047_v40, %v1041_v39  ;;  %v2529_v56 = vcvt.s32.f32 %v742_v47  ;;  %v2531_v57 = vcvt.s32.f32 %v748_v48  ;;  %v844_v58 = vunpack.c.3.s8 %v460_v37 }
  0xd7   :  { %v526_v59 = vunpack.c.2.s8 %v382_v44  ;;  %v1377_v60 = vpack.c.bf16 %v1143_v54, %v1137_v46  ;;  %v2533_v61 = vcvt.s32.f32 %v838_v55  ;;  %v532_v62 = vunpack.c.3.s8 %v382_v44  ;;  %v376_v46 = vld [vmem:[#allocation5 + $0x40] sm:$0xff] }
  0xd8   :  { %v622_v63 = vunpack.c.2.s8 %v406_v49  ;;  %v2537_v1 = vcvt.s32.f32 %v844_v58  ;;  %v628_v4 = vunpack.c.3.s8 %v406_v49  ;;  %v730_v10 = vunpack.c.0.s8 %v436_v32 }
  0xd9   :  { %1509 = vmatpush.bf16.msrb.mxu0 %v1329_v51  ;;  %v2539_v2 = vcvt.s32.f32 %v526_v59  ;;  %v2541_v5 = vcvt.s32.f32 %v532_v62  ;;  %v736_v12 = vunpack.c.1.s8 %v436_v32  ;;  %v826_v19 = vunpack.c.0.s8 %v460_v37 }
  0xda   :  { %1522 = vmatpush.bf16.msrb.mxu1 %v1377_v60  ;;  %v2543_v9 = vcvt.s32.f32 %v622_v63  ;;  %v2547_v14 = vcvt.s32.f32 %v628_v4  ;;  %v832_v20 = vunpack.c.1.s8 %v460_v37  ;;  %v2551_v23 = vcvt.s32.f32 %v730_v10  ;;  %v400_v4 = vld [vmem:[#allocation5 + $0x100] sm:$0xff] }
  0xdb   :  { %v2553_v24 = vcvt.s32.f32 %v736_v12  ;;  %v514_v25 = vunpack.c.0.s8 %v382_v44  ;;  %v2557_v31 = vcvt.s32.f32 %v826_v19  ;;  %v520_v33 = vunpack.c.1.s8 %v382_v44 }
  0xdc   :  { %v2559_v32 = vcvt.s32.f32 %v832_v20  ;;  %v610_v40 = vunpack.c.0.s8 %v406_v49  ;;  %v616_v41 = vunpack.c.1.s8 %v406_v49  ;;  %v718_v51 = vunpack.c.2.s8 %v430_v29 }
  0xdd   :  { %v2563_v39 = vcvt.s32.f32 %v514_v25  ;;  %v2567_v48 = vcvt.s32.f32 %v520_v33  ;;  %v724_v54 = vunpack.c.3.s8 %v430_v29  ;;  %v814_v44 = vunpack.c.2.s8 %v454_v36 }
  0xde   :  { %v2569_v55 = vcvt.s32.f32 %v610_v40  ;;  %v2571_v58 = vcvt.s32.f32 %v616_v41  ;;  %v820_v59 = vunpack.c.3.s8 %v454_v36  ;;  %v2575_v62 = vcvt.s32.f32 %v718_v51 }
  0xdf   :  { %v2577_v49 = vcvt.s32.f32 %v724_v54  ;;  %v502_v63 = vunpack.c.2.s8 %v376_v46  ;;  %v2581_v20 = vcvt.s32.f32 %v814_v44  ;;  %v508_v33 = vunpack.c.3.s8 %v376_v46 }
  0xe0   :  { %v2583_v25 = vcvt.s32.f32 %v820_v59  ;;  %v598_v44 = vunpack.c.2.s8 %v400_v4  ;;  %v604_v59 = vunpack.c.3.s8 %v400_v4  ;;  %v802_v60 = vunpack.c.0.s8 %v454_v36 }
  0xe1   :  { %v2591_v54 = vcvt.s32.f32 %v502_v63  ;;  %v2595_v19 = vcvt.s32.f32 %v508_v33  ;;  %v580_v28 = vunpack.c.3.s8 %v394_v8 }
  0xe2   :  { %v2603_v63 = vcvt.s32.f32 %v598_v44  ;;  %v2605_v51 = vcvt.s32.f32 %v604_v59 }
 0x12f   :  { %v289_v10 = vpop.f32.mrf.mxu0  ;;  %v302_v12 = vpop.f32.mrf.mxu1 }
 0x130   :  { %v342_v40 = vmul.f32 %v334_v17, %v289_v10  ;;  %v343_v41 = vmul.f32 %v335_v18, %v302_v12  ;;  %v706_v10 = vunpack.c.0.s8 %v430_v29  ;;  %v712_v18 = vunpack.c.1.s8 %v430_v29 }
 0x131   :  { %v490_v29 = vunpack.c.0.s8 %v376_v46 }
 0x132   :  { %v356_v47 = vadd.f32 %v348_v26, %v342_v40  ;;  %v357_v17 = vadd.f32 %v349_v27, %v343_v41  ;;  %v2607_v30 = vcvt.s32.f32 %v706_v10  ;;  %v2609_v22 = vcvt.s32.f32 %v712_v18  ;;  %v2615_v41 = vld [vmem:[#allocation5 + $0x1c0] sm:$0xff] }
 0x133   :  { %v808_v27 = vunpack.c.1.s8 %v454_v36  ;;  %v2613_v40 = vcvt.s32.f32 %v802_v60  ;;  %v496_v10 = vunpack.c.1.s8 %v376_v46  ;;  %v592_v46 = vunpack.c.1.s8 %v400_v4 }
 0x134   :  { %v360_v33 = vmax.f32 %v356_v47, 0.0  ;;  %v361_v37 = vmax.f32 %v357_v17, 0.0  ;;  %v586_v17 = vunpack.c.0.s8 %v400_v4  ;;  %v694_v0 = vunpack.c.2.s8 %v2615_v41 }
 0x135   :  { %v2627_v13 = vcvt.s32.f32 %v808_v27  ;;  %v2653_v21 = vcvt.s32.f32 %v592_v46  ;;  %v682_v34 = vunpack.c.0.s8 %v2615_v41  ;;  %v688_v35 = vunpack.c.1.s8 %v2615_v41 }
 0x136   :  { %v2617_v44 = vpack.c.bf16 %v360_v33, %v360_v33  ;;  %v2619_v59 = vpack.c.bf16 %v361_v37, %v361_v37  ;;  %v315_v12 = vpop.f32.mrf.mxu2  ;;  %v328_v47 = vpop.f32.mrf.mxu3  ;;  %v2629_v33 = vcvt.s32.f32 %v490_v29  ;;  %v2633_v37 = vcvt.s32.f32 %v496_v10 }
 0x137   :  { %v344_v18 = vmul.f32 %v336_v42, %v315_v12  ;;  %v345_v36 = vmul.f32 %v337_v43, %v328_v47  ;;  %v291_v60 = vpop.f32.mrf.mxu0  ;;  %v304_v26 = vpop.f32.mrf.mxu1  ;;  %v448_v42 = vld [vmem:[#allocation5 + $0x280] sm:$0xff]  ;;  %v1402_v4 = vpack.c.bf16 %v2627_v13, %v2613_v40  ;;  %v700_v12 = vunpack.c.3.s8 %v2615_v41 }
 0x138   :  { %1432 = vmatmul.bf16.vlgmr.msrb.gmra.mxu2 %v2617_v44  ;;  %1445 = vmatmul.bf16.vlgmr.msrb.gmra.mxu3 %v2619_v59  ;;  %v370_v26 = vld [vmem:[#allocation5 + $0x10] sm:$0xff]  ;;  %v2651_v27 = vcvt.s32.f32 %v586_v17  ;;  %v790_v7 = vunpack.c.2.s8 %v448_v42  ;;  %v796_v29 = vunpack.c.3.s8 %v448_v42  ;;  %v778_v38 = vunpack.c.0.s8 %v448_v42 }
 0x139   :  { %v358_v11 = vadd.f32 %v350_v52, %v344_v18  ;;  %v359_v43 = vadd.f32 %v351_v53, %v345_v36  ;;  %1528 = vmatpush.bf16.msrb.mxu2 %v1276_v15  ;;  %1541 = vmatpush.bf16.msrb.mxu3 %v1324_v16  ;;  %v1246_v52 = vpack.c.bf16 %v2633_v37, %v2629_v33  ;;  %v2655_v53 = vcvt.s32.f32 %v694_v0 }
 0x13a   :  { %v2657_v15 = vcvt.s32.f32 %v700_v12  ;;  %v1294_v16 = vpack.c.bf16 %v2653_v21, %v2651_v27  ;;  %v478_v47 = vunpack.c.2.s8 %v370_v26  ;;  %v484_v10 = vunpack.c.3.s8 %v370_v26 }
 0x13b   :  { %v362_v3 = vmax.f32 %v358_v11, 0.0  ;;  %v363_v6 = vmax.f32 %v359_v43, 0.0  ;;  %v2673_v36 = vcvt.s32.f32 %v790_v7  ;;  %v2675_v11 = vcvt.s32.f32 %v796_v29 }
 0x13c   :  { %v1348_v0 = vpack.c.bf16 %v2657_v15, %v2655_v53  ;;  %v2677_v43 = vcvt.s32.f32 %v478_v47  ;;  %v2679_v12 = vcvt.s32.f32 %v484_v10  ;;  %v784_v47 = vunpack.c.1.s8 %v448_v42  ;;  %v389_v10 = vld [vmem:[#allocation5 + $0xa8] sm:$0xff] }
 0x13d   :  { %v2661_v18 = vpack.c.bf16 %v362_v3, %v362_v3  ;;  %v2663_v17 = vpack.c.bf16 %v363_v6, %v363_v6  ;;  %1529 = vmatpush.bf16.msrb.mxu2 %v1270_v45  ;;  %1542 = vmatpush.bf16.msrb.mxu3 %v1318_v50  ;;  %v574_v3 = vunpack.c.2.s8 %v394_v8  ;;  %v2971_v45 = vpack.c.bf16 %v2531_v57, %v2529_v56 }
 0x13e   :  { %v317_v60 = vpop.f32.mrf.mxu2  ;;  %v330_v46 = vpop.f32.mrf.mxu3  ;;  %v2972_v50 = vpack.c.bf16 %v2537_v1, %v2533_v61  ;;  %v1396_v6 = vpack.c.bf16 %v2675_v11, %v2673_v36  ;;  %v1240_v7 = vpack.c.bf16 %v2679_v12, %v2677_v43  ;;  %v2973_v41 = vpack.c.bf16 %v2541_v5, %v2539_v2 }
 0x13f   :  { %1458 = vmatmul.bf16.vlgmr.msra.gmra.mxu0 %v2661_v18  ;;  %1471 = vmatmul.bf16.vlgmr.msra.gmra.mxu1 %v2663_v17  ;;  %v2695_v29 = vcvt.s32.f32 %v574_v3  ;;  %v2974_v56 = vpack.c.bf16 %v2547_v14, %v2543_v9  ;;  %v2703_v57 = vcvt.s32.f32 %v580_v28  ;;  %v2705_v61 = vcvt.s32.f32 %v682_v34  ;;  %v418_v28 = vld [vmem:[#allocation5 + $0x190] sm:$0xff] }
 0x140   :  { %1554 = vmatpush.bf16.msra.mxu0 %v2971_v45  ;;  %1567 = vmatpush.bf16.msra.mxu1 %v2972_v50  ;;  %v2707_v1 = vcvt.s32.f32 %v688_v35  ;;  %v2709_v60 = vcvt.s32.f32 %v778_v38  ;;  %v2711_v46 = vcvt.s32.f32 %v784_v47  ;;  %v466_v42 = vunpack.c.0.s8 %v370_v26  ;;  %v413_v50 = vld [vmem:[#allocation5 + $0x168] sm:$0xff] }
 0x141   :  { %1530 = vmatpush.bf16.msrb.mxu2 %v2973_v41  ;;  %1543 = vmatpush.bf16.msrb.mxu3 %v2974_v56  ;;  %v472_v3 = vunpack.c.1.s8 %v370_v26  ;;  %v562_v45 = vunpack.c.0.s8 %v394_v8  ;;  %v1288_v2 = vpack.c.bf16 %v2703_v57, %v2695_v29  ;;  %v568_v9 = vunpack.c.1.s8 %v394_v8  ;;  %v442_v8 = vld [vmem:[#allocation5 + $0x250] sm:$0xff] }
 0x142   :  { %v1342_v5 = vpack.c.bf16 %v2707_v1, %v2705_v61  ;;  %v551_v14 = vunpack.c.2.s8 %v389_v10  ;;  %v2975_v34 = vpack.c.bf16 %v2553_v24, %v2551_v23  ;;  %v2976_v35 = vpack.c.bf16 %v2559_v32, %v2557_v31 }
 0x143   :  { %v1390_v26 = vpack.c.bf16 %v2711_v46, %v2709_v60  ;;  %v2725_v38 = vcvt.s32.f32 %v466_v42  ;;  %v2727_v47 = vcvt.s32.f32 %v472_v3  ;;  %v2729_v41 = vcvt.s32.f32 %v562_v45 }
 0x144   :  { %1555 = vmatpush.bf16.msra.mxu0 %v2975_v34  ;;  %1568 = vmatpush.bf16.msra.mxu1 %v2976_v35  ;;  %v2977_v56 = vpack.c.bf16 %v2567_v48, %v2563_v39  ;;  %v2978_v23 = vpack.c.bf16 %v2571_v58, %v2569_v55  ;;  %v2737_v24 = vcvt.s32.f32 %v568_v9  ;;  %v557_v31 = vunpack.c.3.s8 %v389_v10 }
 0x145   :  { %v2739_v32 = vcvt.s32.f32 %v551_v14  ;;  %v647_v42 = vunpack.c.2.s8 %v413_v50  ;;  %v653_v45 = vunpack.c.3.s8 %v413_v50  ;;  %v670_v34 = vunpack.c.2.s8 %v418_v28 }
 0x146   :  { %1531 = vmatpush.bf16.msrb.mxu2 %v2977_v56  ;;  %1544 = vmatpush.bf16.msrb.mxu3 %v2978_v23  ;;  %v676_v35 = vunpack.c.3.s8 %v418_v28  ;;  %v2745_v48 = vcvt.s32.f32 %v557_v31  ;;  %v766_v55 = vunpack.c.2.s8 %v442_v8  ;;  %v2979_v58 = vpack.c.bf16 %v2577_v49, %v2575_v62 }
 0x147   :  { %v2747_v56 = vcvt.s32.f32 %v647_v42  ;;  %v2980_v9 = vpack.c.bf16 %v2583_v25, %v2581_v20  ;;  %v2755_v14 = vcvt.s32.f32 %v653_v45  ;;  %v2757_v23 = vcvt.s32.f32 %v670_v34 }
 0x148   :  { %1556 = vmatpush.bf16.msra.mxu0 %v2979_v58  ;;  %v2759_v3 = vcvt.s32.f32 %v676_v35  ;;  %v772_v39 = vunpack.c.3.s8 %v442_v8  ;;  %1484 = vmatmul.bf16.vlgmr.msra.gmra.mxu2 %v2617_v44  ;;  %v1277_v31 = vpack.c.bf16 %v2745_v48, %v2739_v32  ;;  %v2765_v62 = vcvt.s32.f32 %v766_v55 }
 0x149   :  { %1569 = vmatpush.bf16.msra.mxu1 %v2980_v9  ;;  %1497 = vmatmul.bf16.vlgmr.msra.gmra.mxu3 %v2619_v59  ;;  %v539_v49 = vunpack.c.0.s8 %v389_v10  ;;  %v545_v42 = vunpack.c.1.s8 %v389_v10  ;;  %v2981_v20 = vpack.c.bf16 %v2595_v19, %v2591_v54  ;;  %v2982_v25 = vpack.c.bf16 %v2605_v51, %v2603_v63  ;;  %v437_v54 = vld [vmem:[#allocation5 + $0x228] sm:$0xff] }
 0x14a   :  { %v1325_v45 = vpack.c.bf16 %v2755_v14, %v2747_v56  ;;  %v2777_v35 = vcvt.s32.f32 %v772_v39  ;;  %v635_v55 = vunpack.c.0.s8 %v413_v50  ;;  %v641_v9 = vunpack.c.1.s8 %v413_v50 }
 0x14b   :  { %1532 = vmatpush.bf16.msrb.mxu2 %v2981_v20  ;;  %1545 = vmatpush.bf16.msrb.mxu3 %v2982_v25  ;;  %v2779_v58 = vcvt.s32.f32 %v539_v49  ;;  %v2781_v10 = vcvt.s32.f32 %v545_v42  ;;  %v658_v19 = vunpack.c.0.s8 %v418_v28  ;;  %v2983_v51 = vpack.c.bf16 %v2609_v22, %v2607_v30  ;;  %v461_v42 = vld [vmem:[#allocation5 + $0x2e8] sm:$0xff]  ;;  %v383_v30 = vld [vmem:[#allocation5 + $0x78] sm:$0xff] }
 0x14c   :  { %v1384_v63 = vpack.c.bf16 %v2777_v35, %v2765_v62  ;;  %v2791_v39 = vcvt.s32.f32 %v635_v55  ;;  %v664_v49 = vunpack.c.1.s8 %v418_v28  ;;  %v754_v20 = vunpack.c.0.s8 %v442_v8 }
 0x14d   :  { %1557 = vmatpush.bf16.msra.mxu0 %v2983_v51  ;;  %1570 = vmatpush.bf16.msra.mxu1 %v1402_v4  ;;  %v1271_v50 = vpack.c.bf16 %v2781_v10, %v2779_v58  ;;  %v2795_v25 = vcvt.s32.f32 %v641_v9  ;;  %v2797_v34 = vcvt.s32.f32 %v658_v19  ;;  %v760_v22 = vunpack.c.1.s8 %v442_v8 }
 0x14e   :  { %v2805_v13 = vcvt.s32.f32 %v664_v49  ;;  %v2807_v40 = vcvt.s32.f32 %v754_v20  ;;  %v743_v4 = vunpack.c.2.s8 %v437_v54  ;;  %v749_v28 = vunpack.c.3.s8 %v437_v54 }
 0x14f   :  { %1533 = vmatpush.bf16.msrb.mxu2 %v1246_v52  ;;  %1546 = vmatpush.bf16.msrb.mxu3 %v1294_v16  ;;  %v1319_v8 = vpack.c.bf16 %v2795_v25, %v2791_v39  ;;  %v2813_v55 = vcvt.s32.f32 %v760_v22  ;;  %v839_v33 = vunpack.c.2.s8 %v461_v42  ;;  %v845_v37 = vunpack.c.3.s8 %v461_v42  ;;  %v407_v52 = vld [vmem:[#allocation5 + $0x138] sm:$0xff] }
 0x150   :  { %1510 = vmatmul.bf16.vlgmr.msrb.gmra.mxu0 %v2661_v18  ;;  %1523 = vmatmul.bf16.vlgmr.msrb.gmra.mxu1 %v2663_v17  ;;  %v1330_v27 = vpack.c.bf16 %v2805_v13, %v2797_v34  ;;  %v2823_v21 = vcvt.s32.f32 %v743_v4  ;;  %v2825_v16 = vcvt.s32.f32 %v749_v28  ;;  %v527_v9 = vunpack.c.2.s8 %v383_v30  ;;  %v431_v28 = vld [vmem:[#allocation5 + $0x1f8] sm:$0xff] }
 0x151   :  { %1558 = vmatpush.bf16.msra.mxu0 %v1348_v0  ;;  %1571 = vmatpush.bf16.msra.mxu1 %v1396_v6  ;;  %v1378_v19 = vpack.c.bf16 %v2813_v55, %v2807_v40  ;;  %v2829_v51 = vcvt.s32.f32 %v839_v33  ;;  %v2831_v49 = vcvt.s32.f32 %v845_v37  ;;  %v533_v53 = vunpack.c.3.s8 %v383_v30  ;;  %v377_v55 = vld [vmem:[#allocation5 + $0x48] sm:$0xff] }
 0x152   :  { %v1373_v15 = vpack.c.bf16 %v2825_v16, %v2823_v21  ;;  %v2841_v0 = vcvt.s32.f32 %v527_v9  ;;  %v623_v36 = vunpack.c.2.s8 %v407_v52  ;;  %v629_v11 = vunpack.c.3.s8 %v407_v52 }
 0x153   :  { %1534 = vmatpush.bf16.msrb.mxu2 %v1240_v7  ;;  %1547 = vmatpush.bf16.msrb.mxu3 %v1288_v2  ;;  %v1421_v6 = vpack.c.bf16 %v2831_v49, %v2829_v51  ;;  %v2845_v20 = vcvt.s32.f32 %v533_v53  ;;  %v731_v22 = vunpack.c.0.s8 %v437_v54  ;;  %v737_v40 = vunpack.c.1.s8 %v437_v54 }
 0x154   :  { %v2853_v43 = vcvt.s32.f32 %v623_v36  ;;  %v1013_v12 = vcvt.s32.f32 %v629_v11  ;;  %v827_v7 = vunpack.c.0.s8 %v461_v42  ;;  %v833_v29 = vunpack.c.1.s8 %v461_v42  ;;  %v455_v42 = vld [vmem:[#allocation5 + $0x2b8] sm:$0xff] }
 0x155   :  { %1559 = vmatpush.bf16.msra.mxu0 %v1342_v5  ;;  %1572 = vmatpush.bf16.msra.mxu1 %v1390_v26  ;;  %v1265_v57 = vpack.c.bf16 %v2845_v20, %v2841_v0  ;;  %v2857_v2 = vcvt.s32.f32 %v731_v22  ;;  %v2859_v4 = vcvt.s32.f32 %v737_v40  ;;  %v515_v54 = vunpack.c.0.s8 %v383_v30 }
 0x156   :  { %v2984_v61 = vpack.c.bf16 %v2727_v47, %v2725_v38  ;;  %v2985_v1 = vpack.c.bf16 %v2737_v24, %v2729_v41  ;;  %v1313_v60 = vpack.c.bf16 %v1013_v12, %v2853_v43  ;;  %v2868_v46 = vcvt.s32.f32 %v827_v7  ;;  %v449_v43 = vld [vmem:[#allocation5 + $0x288] sm:$0xff] }
 0x157   :  { %v2870_v5 = vcvt.s32.f32 %v833_v29  ;;  %v521_v26 = vunpack.c.1.s8 %v383_v30  ;;  %v1367_v38 = vpack.c.bf16 %v2859_v4, %v2857_v2  ;;  %v2880_v47 = vcvt.s32.f32 %v515_v54  ;;  %v371_v2 = vld [vmem:[#allocation5 + $0x18] sm:$0xff] }
 0x158   :  { %1535 = vmatpush.bf16.msrb.mxu2 %v2984_v61  ;;  %1548 = vmatpush.bf16.msrb.mxu3 %v2985_v1  ;;  %v611_v41 = vunpack.c.0.s8 %v407_v52  ;;  %v617_v24 = vunpack.c.1.s8 %v407_v52  ;;  %v2986_v30 = vpack.c.bf16 %v2759_v3, %v2757_v23  ;;  %v719_v56 = vunpack.c.2.s8 %v431_v28  ;;  %v401_v3 = vld [vmem:[#allocation5 + $0x108] sm:$0xff] }
 0x159   :  { %1573 = vmatpush.bf16.msra.mxu1 %v1384_v63  ;;  %v1415_v32 = vpack.c.bf16 %v2870_v5, %v2868_v46  ;;  %v905_v48 = vcvt.s32.f32 %v521_v26  ;;  %v725_v14 = vunpack.c.3.s8 %v431_v28  ;;  %v815_v33 = vunpack.c.2.s8 %v455_v42  ;;  %v395_v26 = vld [vmem:[#allocation5 + $0xd8] sm:$0xff] }
 0x15a   :  { %1560 = vmatpush.bf16.msra.mxu0 %v2986_v30  ;;  %v821_v37 = vunpack.c.3.s8 %v455_v42  ;;  %v1103_v52 = vcvt.s32.f32 %v719_v56  ;;  %v503_v35 = vunpack.c.2.s8 %v377_v55  ;;  %v509_v9 = vunpack.c.3.s8 %v377_v55 }
 0x15b   :  { %1536 = vmatmul.bf16.vlgmr.msrb.gmra.mxu2 %v2617_v44  ;;  %1549 = vmatmul.bf16.vlgmr.msrb.gmra.mxu3 %v2619_v59  ;;  %v1259_v23 = vpack.c.bf16 %v905_v48, %v2880_v47  ;;  %v1109_v62 = vcvt.s32.f32 %v725_v14  ;;  %v1199_v21 = vcvt.s32.f32 %v815_v33  ;;  %v599_v53 = vunpack.c.2.s8 %v401_v3 }
 0x15c   :  { %1580 = vmatpush.bf16.msra.mxu2 %v1277_v31  ;;  %1593 = vmatpush.bf16.msra.mxu3 %v1325_v45  ;;  %v995_v31 = vcvt.s32.f32 %v611_v41  ;;  %v1001_v45 = vcvt.s32.f32 %v617_v24  ;;  %v1205_v16 = vcvt.s32.f32 %v821_v37  ;;  %v887_v49 = vcvt.s32.f32 %v503_v35 }
 0x15d   :  { %1574 = vmatpush.bf16.msra.mxu1 %v1378_v19  ;;  %v1361_v51 = vpack.c.bf16 %v1109_v62, %v1103_v52  ;;  %v605_v0 = vunpack.c.3.s8 %v401_v3  ;;  %v893_v10 = vcvt.s32.f32 %v509_v9  ;;  %v713_v39 = vunpack.c.1.s8 %v431_v28  ;;  %v425_v19 = vld [vmem:[#allocation5 + $0x1c8] sm:$0xff] }
 0x15e   :  { %v1307_v63 = vpack.c.bf16 %v1001_v45, %v995_v31  ;;  %1561 = vmatpush.bf16.msra.mxu0 %v1330_v27  ;;  %v1409_v58 = vpack.c.bf16 %v1205_v16, %v1199_v21  ;;  %v983_v25 = vcvt.s32.f32 %v599_v53  ;;  %v803_v36 = vunpack.c.0.s8 %v455_v42 }
 0x15f   :  { %v809_v11 = vunpack.c.1.s8 %v455_v42  ;;  %v1253_v20 = vpack.c.bf16 %v893_v10, %v887_v49  ;;  %v1097_v13 = vcvt.s32.f32 %v713_v39  ;;  %v491_v27 = vunpack.c.0.s8 %v377_v55  ;;  %v414_v10 = vld [vmem:[#allocation5 + $0x170] sm:$0xff] }
 0x160   :  { %1581 = vmatpush.bf16.msra.mxu2 %v1271_v50  ;;  %1594 = vmatpush.bf16.msra.mxu3 %v1319_v8  ;;  %v707_v50 = vunpack.c.0.s8 %v431_v28  ;;  %v989_v8 = vcvt.s32.f32 %v605_v0  ;;  %v497_v40 = vunpack.c.1.s8 %v377_v55  ;;  %v587_v29 = vunpack.c.0.s8 %v401_v3 }
 0x161   :  { %1619 = vmatpush.bf16.msrb.mxu1 %v1421_v6  ;;  %1562 = vmatmul.bf16.vlgmr.msra.gmra.mxu0 %v2661_v18  ;;  %v1187_v6 = vcvt.s32.f32 %v803_v36  ;;  %v1193_v22 = vcvt.s32.f32 %v809_v11  ;;  %v875_v7 = vcvt.s32.f32 %v491_v27  ;;  %v695_v28 = vunpack.c.2.s8 %v425_v19  ;;  %v419_v36 = vld [vmem:[#allocation5 + $0x198] sm:$0xff] }
 0x162   :  { %1606 = vmatpush.bf16.msrb.mxu0 %v1373_v15  ;;  %v1091_v34 = vcvt.s32.f32 %v707_v50  ;;  %1575 = vmatmul.bf16.vlgmr.msra.gmra.mxu1 %v2663_v17  ;;  %v1301_v15 = vpack.c.bf16 %v989_v8, %v983_v25  ;;  %v881_v54 = vcvt.s32.f32 %v497_v40  ;;  %v701_v61 = vunpack.c.3.s8 %v425_v19 }
 0x163   :  { %v1403_v4 = vpack.c.bf16 %v1193_v22, %v1187_v6  ;;  %v971_v1 = vcvt.s32.f32 %v587_v29  ;;  %v791_v46 = vunpack.c.2.s8 %v449_v43  ;;  %v797_v5 = vunpack.c.3.s8 %v449_v43  ;;  %v443_v22 = vld [vmem:[#allocation5 + $0x258] sm:$0xff] }
 0x164   :  { %1582 = vmatpush.bf16.msra.mxu2 %v1265_v57  ;;  %1595 = vmatpush.bf16.msra.mxu3 %v1313_v60  ;;  %v1355_v12 = vpack.c.bf16 %v1097_v13, %v1091_v34  ;;  %v593_v57 = vunpack.c.1.s8 %v401_v3  ;;  %v1247_v42 = vpack.c.bf16 %v881_v54, %v875_v7  ;;  %v1079_v47 = vcvt.s32.f32 %v695_v28 }
 0x165   :  { %1620 = vmatpush.bf16.msrb.mxu1 %v1415_v32  ;;  %v479_v41 = vunpack.c.2.s8 %v371_v2  ;;  %v1175_v55 = vcvt.s32.f32 %v791_v46  ;;  %v1181_v30 = vcvt.s32.f32 %v797_v5  ;;  %v485_v32 = vunpack.c.3.s8 %v371_v2 }
 0x166   :  { %1607 = vmatpush.bf16.msrb.mxu0 %v1367_v38  ;;  %v977_v60 = vcvt.s32.f32 %v593_v57  ;;  %v1085_v38 = vcvt.s32.f32 %v701_v61  ;;  %v575_v14 = vunpack.c.2.s8 %v395_v26  ;;  %v581_v31 = vunpack.c.3.s8 %v395_v26 }
 0x167   :  { %v863_v56 = vcvt.s32.f32 %v479_v41  ;;  %v1397_v45 = vpack.c.bf16 %v1181_v30, %v1175_v55  ;;  %v869_v33 = vcvt.s32.f32 %v485_v32  ;;  %v683_v37 = vunpack.c.0.s8 %v425_v19 }
 0x168   :  { %1583 = vmatpush.bf16.msra.mxu2 %v1259_v23  ;;  %1596 = vmatpush.bf16.msra.mxu3 %v1307_v63  ;;  %v1295_v24 = vpack.c.bf16 %v977_v60, %v971_v1  ;;  %v1349_v48 = vpack.c.bf16 %v1085_v38, %v1079_v47  ;;  %v689_v3 = vunpack.c.1.s8 %v425_v19  ;;  %v959_v23 = vcvt.s32.f32 %v575_v14 }
 0x169   :  { %1621 = vmatpush.bf16.msrb.mxu1 %v1409_v58  ;;  %v965_v52 = vcvt.s32.f32 %v581_v31  ;;  %v779_v62 = vunpack.c.0.s8 %v449_v43  ;;  %v785_v35 = vunpack.c.1.s8 %v449_v43  ;;  %v1241_v63 = vpack.c.bf16 %v869_v33, %v863_v56  ;;  %v462_v33 = vld [vmem:[#allocation5 + $0x2f0] sm:$0xff] }
 0x16a   :  { %1608 = vmatpush.bf16.msrb.mxu0 %v1361_v51  ;;  %v1067_v21 = vcvt.s32.f32 %v683_v37  ;;  %v1073_v16 = vcvt.s32.f32 %v689_v3  ;;  %v467_v9 = vunpack.c.0.s8 %v371_v2  ;;  %v390_v51 = vld [vmem:[#allocation5 + $0xb0] sm:$0xff]  ;;  %v473_v58 = vunpack.c.1.s8 %v371_v2 }
 0x16b   :  { %v1289_v49 = vpack.c.bf16 %v965_v52, %v959_v23  ;;  %v1163_v53 = vcvt.s32.f32 %v779_v62  ;;  %v1169_v0 = vcvt.s32.f32 %v785_v35  ;;  %v563_v25 = vunpack.c.0.s8 %v395_v26  ;;  %v384_v62 = vld [vmem:[#allocation5 + $0x80] sm:$0xff] }
 0x16c   :  { %1584 = vmatpush.bf16.msra.mxu2 %v1253_v20  ;;  %1597 = vmatpush.bf16.msra.mxu3 %v1301_v15  ;;  %v1343_v50 = vpack.c.bf16 %v1073_v16, %v1067_v21  ;;  %v851_v39 = vcvt.s32.f32 %v467_v9  ;;  %v569_v8 = vunpack.c.1.s8 %v395_v26  ;;  %v857_v20 = vcvt.s32.f32 %v473_v58 }
 0x16d   :  { %1622 = vmatpush.bf16.msrb.mxu1 %v1403_v4  ;;  %v1391_v11 = vpack.c.bf16 %v1169_v0, %v1163_v53  ;;  %v552_v34 = vunpack.c.2.s8 %v390_v51  ;;  %v558_v13 = vunpack.c.3.s8 %v390_v51  ;;  %v947_v27 = vcvt.s32.f32 %v563_v25  ;;  %v408_v0 = vld [vmem:[#allocation5 + $0x140] sm:$0xff] }
 0x16e   :  { %1609 = vmatpush.bf16.msrb.mxu0 %v1355_v12  ;;  %v953_v19 = vcvt.s32.f32 %v569_v8  ;;  %v648_v15 = vunpack.c.2.s8 %v414_v10  ;;  %v654_v6 = vunpack.c.3.s8 %v414_v10  ;;  %v1235_v40 = vpack.c.bf16 %v857_v20, %v851_v39 }
 0x16f   :  { %v936_v43 = vcvt.s32.f32 %v552_v34  ;;  %v942_v12 = vcvt.s32.f32 %v558_v13  ;;  %v671_v7 = vunpack.c.2.s8 %v419_v36  ;;  %v677_v4 = vunpack.c.3.s8 %v419_v36 }
 0x170   :  { %1585 = vmatpush.bf16.msra.mxu2 %v1247_v42  ;;  %1598 = vmatpush.bf16.msra.mxu3 %v1295_v24  ;;  %v1283_v29 = vpack.c.bf16 %v953_v19, %v947_v27  ;;  %v1032_v57 = vcvt.s32.f32 %v648_v15  ;;  %v1038_v2 = vcvt.s32.f32 %v654_v6  ;;  %v767_v61 = vunpack.c.2.s8 %v443_v22 }
 0x171   :  { %1623 = vmatpush.bf16.msrb.mxu1 %v1397_v45  ;;  %v1278_v54 = vpack.c.bf16 %v942_v12, %v936_v43  ;;  %v1055_v28 = vcvt.s32.f32 %v671_v7  ;;  %v773_v1 = vunpack.c.3.s8 %v443_v22  ;;  %v1061_v46 = vcvt.s32.f32 %v677_v4 }
 0x172   :  { %1610 = vmatpush.bf16.msrb.mxu0 %v1349_v48  ;;  %v1326_v60 = vpack.c.bf16 %v1038_v2, %v1032_v57  ;;  %v540_v5 = vunpack.c.0.s8 %v390_v51  ;;  %v546_v26 = vunpack.c.1.s8 %v390_v51  ;;  %v1151_v42 = vcvt.s32.f32 %v767_v61  ;;  %v438_v48 = vld [vmem:[#allocation5 + $0x230] sm:$0xff] }
 0x173   :  { %v1157_v47 = vcvt.s32.f32 %v773_v1  ;;  %v636_v38 = vunpack.c.0.s8 %v414_v10  ;;  %v642_v41 = vunpack.c.1.s8 %v414_v10  ;;  %v1337_v24 = vpack.c.bf16 %v1061_v46, %v1055_v28  ;;  %v456_v46 = vld [vmem:[#allocation5 + $0x2c0] sm:$0xff] }
 0x174   :  { %1586 = vmatpush.bf16.msra.mxu2 %v1241_v63  ;;  %1599 = vmatpush.bf16.msra.mxu3 %v1289_v49  ;;  %v924_v55 = vcvt.s32.f32 %v540_v5  ;;  %v930_v30 = vcvt.s32.f32 %v546_v26  ;;  %v659_v32 = vunpack.c.0.s8 %v419_v36  ;;  %v665_v45 = vunpack.c.1.s8 %v419_v36 }
 0x175   :  { %1624 = vmatpush.bf16.msrb.mxu1 %v1391_v11  ;;  %v1385_v56 = vpack.c.bf16 %v1157_v47, %v1151_v42  ;;  %v1020_v14 = vcvt.s32.f32 %v636_v38  ;;  %v1026_v31 = vcvt.s32.f32 %v642_v41  ;;  %v755_v23 = vunpack.c.0.s8 %v443_v22  ;;  %v378_v38 = vld [vmem:[#allocation5 + $0x50] sm:$0xff] }
 0x176   :  { %1611 = vmatpush.bf16.msrb.mxu0 %v1343_v50  ;;  %v1272_v37 = vpack.c.bf16 %v930_v30, %v924_v55  ;;  %v1043_v3 = vcvt.s32.f32 %v659_v32  ;;  %v761_v52 = vunpack.c.1.s8 %v443_v22  ;;  %v1049_v63 = vcvt.s32.f32 %v665_v45 }
 0x177   :  { %v1320_v35 = vpack.c.bf16 %v1026_v31, %v1020_v14  ;;  %v744_v21 = vunpack.c.2.s8 %v438_v48  ;;  %v750_v16 = vunpack.c.3.s8 %v438_v48  ;;  %v1139_v9 = vcvt.s32.f32 %v755_v23  ;;  %v402_v31 = vld [vmem:[#allocation5 + $0x110] sm:$0xff] }
 0x178   :  { %1587 = vmatpush.bf16.msra.mxu2 %v1235_v40  ;;  %1600 = vmatpush.bf16.msra.mxu3 %v1283_v29  ;;  %v1145_v51 = vcvt.s32.f32 %v761_v52  ;;  %v840_v49 = vunpack.c.2.s8 %v462_v33  ;;  %v846_v53 = vunpack.c.3.s8 %v462_v33  ;;  %v1331_v58 = vpack.c.bf16 %v1049_v63, %v1043_v3 }
 0x179   :  { %1625 = vmatpush.bf16.msrb.mxu1 %v1385_v56  ;;  %v1128_v10 = vcvt.s32.f32 %v744_v21  ;;  %v1134_v50 = vcvt.s32.f32 %v750_v16  ;;  %v528_v39 = vunpack.c.2.s8 %v384_v62  ;;  %v534_v11 = vunpack.c.3.s8 %v384_v62 }
 0x17a   :  { %1612 = vmatpush.bf16.msrb.mxu0 %v1337_v24  ;;  %v1379_v25 = vpack.c.bf16 %v1145_v51, %v1139_v9  ;;  %v1224_v8 = vcvt.s32.f32 %v840_v49  ;;  %v1230_v36 = vcvt.s32.f32 %v846_v53  ;;  %v624_v13 = vunpack.c.2.s8 %v408_v0 }
 0x17b   :  { %1588 = vmatmul.bf16.vlgmr.msra.gmra.mxu2 %v2617_v44  ;;  %1601 = vmatmul.bf16.vlgmr.msra.gmra.mxu3 %v2619_v59  ;;  %v1374_v20 = vpack.c.bf16 %v1134_v50, %v1128_v10  ;;  %v912_v34 = vcvt.s32.f32 %v528_v39  ;;  %v630_v27 = vunpack.c.3.s8 %v408_v0  ;;  %v918_v15 = vcvt.s32.f32 %v534_v11 }
 0x17c   :  { %1632 = vmatpush.bf16.msrb.mxu2 %v1278_v54  ;;  %1645 = vmatpush.bf16.msrb.mxu3 %v1326_v60  ;;  %v1422_v19 = vpack.c.bf16 %v1230_v36, %v1224_v8  ;;  %v732_v6 = vunpack.c.0.s8 %v438_v48  ;;  %v738_v22 = vunpack.c.1.s8 %v438_v48  ;;  %v1008_v40 = vcvt.s32.f32 %v624_v13  ;;  %v432_v54 = vld [vmem:[#allocation5 + $0x200] sm:$0xff] }
 0x17d   :  { %1626 = vmatpush.bf16.msrb.mxu1 %v1379_v25  ;;  %v1014_v43 = vcvt.s32.f32 %v630_v27  ;;  %v828_v12 = vunpack.c.0.s8 %v462_v33  ;;  %v834_v7 = vunpack.c.1.s8 %v462_v33  ;;  %v1266_v29 = vpack.c.bf16 %v918_v15, %v912_v34  ;;  %v450_v15 = vld [vmem:[#allocation5 + $0x290] sm:$0xff] }
 0x17e   :  { %1613 = vmatpush.bf16.msrb.mxu0 %v1331_v58  ;;  %v1116_v57 = vcvt.s32.f32 %v732_v6  ;;  %v1122_v2 = vcvt.s32.f32 %v738_v22  ;;  %v516_v4 = vunpack.c.0.s8 %v384_v62  ;;  %v522_v60 = vunpack.c.1.s8 %v384_v62 }
 0x17f   :  { %v1314_v28 = vpack.c.bf16 %v1014_v43, %v1008_v40  ;;  %v1212_v61 = vcvt.s32.f32 %v828_v12  ;;  %v1218_v1 = vcvt.s32.f32 %v834_v7  ;;  %v612_v42 = vunpack.c.0.s8 %v408_v0  ;;  %v372_v12 = vld [vmem:[#allocation5 + $0x20] sm:$0xff] }
 0x180   :  { %1633 = vmatpush.bf16.msrb.mxu2 %v1272_v37  ;;  %1646 = vmatpush.bf16.msrb.mxu3 %v1320_v35  ;;  %v1368_v5 = vpack.c.bf16 %v1122_v2, %v1116_v57  ;;  %v900_v26 = vcvt.s32.f32 %v516_v4  ;;  %v618_v47 = vunpack.c.1.s8 %v408_v0  ;;  %v906_v24 = vcvt.s32.f32 %v522_v60 }
 0x181   :  { %1671 = vmatpush.bf16.msra.mxu1 %v1422_v19  ;;  %1614 = vmatmul.bf16.vlgmr.msrb.gmra.mxu0 %v2661_v18  ;;  %v1416_v41 = vpack.c.bf16 %v1218_v1, %v1212_v61  ;;  %v720_v55 = vunpack.c.2.s8 %v432_v54  ;;  %v726_v30 = vunpack.c.3.s8 %v432_v54  ;;  %v996_v32 = vcvt.s32.f32 %v612_v42  ;;  %v396_v1 = vld [vmem:[#allocation5 + $0xe0] sm:$0xff] }
 0x182   :  { %1658 = vmatpush.bf16.msra.mxu0 %v1374_v20  ;;  %1627 = vmatmul.bf16.vlgmr.msrb.gmra.mxu1 %v2663_v17  ;;  %v1002_v48 = vcvt.s32.f32 %v618_v47  ;;  %v816_v56 = vunpack.c.2.s8 %v456_v46  ;;  %v822_v14 = vunpack.c.3.s8 %v456_v46  ;;  %v1260_v45 = vpack.c.bf16 %v906_v24, %v900_v26  ;;  %v426_v20 = vld [vmem:[#allocation5 + $0x1d0] sm:$0xff] }
 0x183   :  { %v1104_v33 = vcvt.s32.f32 %v720_v55  ;;  %v1110_v37 = vcvt.s32.f32 %v726_v30  ;;  %v504_v3 = vunpack.c.2.s8 %v378_v38  ;;  %v510_v35 = vunpack.c.3.s8 %v378_v38 }
 0x184   :  { %1634 = vmatpush.bf16.msrb.mxu2 %v1266_v29  ;;  %1647 = vmatpush.bf16.msrb.mxu3 %v1314_v28  ;;  %v1308_v23 = vpack.c.bf16 %v1002_v48, %v996_v32  ;;  %v1200_v52 = vcvt.s32.f32 %v816_v56  ;;  %v1206_v62 = vcvt.s32.f32 %v822_v14  ;;  %v600_v16 = vunpack.c.2.s8 %v402_v31 }
 0x185   :  { %1672 = vmatpush.bf16.msra.mxu1 %v1416_v41  ;;  %v1362_v63 = vpack.c.bf16 %v1110_v37, %v1104_v33  ;;  %v888_v21 = vcvt.s32.f32 %v504_v3  ;;  %v606_v9 = vunpack.c.3.s8 %v402_v31  ;;  %v894_v49 = vcvt.s32.f32 %v510_v35 }
 0x186   :  { %1659 = vmatpush.bf16.msra.mxu0 %v1368_v5  ;;  %v1410_v51 = vpack.c.bf16 %v1206_v62, %v1200_v52  ;;  %v708_v53 = vunpack.c.0.s8 %v432_v54  ;;  %v714_v0 = vunpack.c.1.s8 %v432_v54  ;;  %v984_v58 = vcvt.s32.f32 %v600_v16 }
 0x187   :  { %v990_v10 = vcvt.s32.f32 %v606_v9  ;;  %v804_v50 = vunpack.c.0.s8 %v456_v46  ;;  %v810_v39 = vunpack.c.1.s8 %v456_v46  ;;  %v1254_v25 = vpack.c.bf16 %v894_v49, %v888_v21  ;;  %v415_v49 = vld [vmem:[#allocation5 + $0x178] sm:$0xff] }
 0x188   :  { %1635 = vmatpush.bf16.msrb.mxu2 %v1260_v45  ;;  %1648 = vmatpush.bf16.msrb.mxu3 %v1308_v23  ;;  %v1092_v8 = vcvt.s32.f32 %v708_v53  ;;  %v1098_v36 = vcvt.s32.f32 %v714_v0  ;;  %v492_v11 = vunpack.c.0.s8 %v378_v38  ;;  %v498_v19 = vunpack.c.1.s8 %v378_v38 }
 0x189   :  { %1673 = vmatpush.bf16.msra.mxu1 %v1410_v51  ;;  %v1302_v34 = vpack.c.bf16 %v990_v10, %v984_v58  ;;  %v1188_v13 = vcvt.s32.f32 %v804_v50  ;;  %v1194_v27 = vcvt.s32.f32 %v810_v39  ;;  %v588_v40 = vunpack.c.0.s8 %v402_v31  ;;  %v420_v50 = vld [vmem:[#allocation5 + $0x1a0] sm:$0xff] }
 0x18a   :  { %1660 = vmatpush.bf16.msra.mxu0 %v1362_v63  ;;  %v1356_v6 = vpack.c.bf16 %v1098_v36, %v1092_v8  ;;  %v876_v22 = vcvt.s32.f32 %v492_v11  ;;  %v594_v43 = vunpack.c.1.s8 %v402_v31  ;;  %v882_v29 = vcvt.s32.f32 %v498_v19  ;;  %v391_v63 = vld [vmem:[#allocation5 + $0xb8] sm:$0xff] }
 0x18b   :  { %v1404_v7 = vpack.c.bf16 %v1194_v27, %v1188_v13  ;;  %v696_v57 = vunpack.c.2.s8 %v426_v20  ;;  %v702_v2 = vunpack.c.3.s8 %v426_v20  ;;  %v972_v4 = vcvt.s32.f32 %v588_v40  ;;  %v444_v27 = vld [vmem:[#allocation5 + $0x260] sm:$0xff] }
 0x18c   :  { %1636 = vmatpush.bf16.msrb.mxu2 %v1254_v25  ;;  %1649 = vmatpush.bf16.msrb.mxu3 %v1302_v34  ;;  %v978_v54 = vcvt.s32.f32 %v594_v43  ;;  %v792_v28 = vunpack.c.2.s8 %v450_v15  ;;  %v798_v61 = vunpack.c.3.s8 %v450_v15  ;;  %v1248_v60 = vpack.c.bf16 %v882_v29, %v876_v22 }
 0x18d   :  { %1674 = vmatpush.bf16.msra.mxu1 %v1404_v7  ;;  %v1080_v46 = vcvt.s32.f32 %v696_v57  ;;  %v1086_v5 = vcvt.s32.f32 %v702_v2  ;;  %v480_v26 = vunpack.c.2.s8 %v372_v12  ;;  %v486_v41 = vunpack.c.3.s8 %v372_v12 }
 0x18e   :  { %1661 = vmatpush.bf16.msra.mxu0 %v1356_v6  ;;  %v1296_v42 = vpack.c.bf16 %v978_v54, %v972_v4  ;;  %v1176_v47 = vcvt.s32.f32 %v792_v28  ;;  %v1182_v38 = vcvt.s32.f32 %v798_v61  ;;  %v576_v30 = vunpack.c.2.s8 %v396_v1 }
 0x18f   :  { %v1350_v24 = vpack.c.bf16 %v1086_v5, %v1080_v46  ;;  %v864_v55 = vcvt.s32.f32 %v480_v26  ;;  %v582_v32 = vunpack.c.3.s8 %v396_v1  ;;  %v870_v56 = vcvt.s32.f32 %v486_v41 }
 0x190   :  { %1637 = vmatpush.bf16.msrb.mxu2 %v1248_v60  ;;  %1650 = vmatpush.bf16.msrb.mxu3 %v1296_v42  ;;  %v1398_v48 = vpack.c.bf16 %v1182_v38, %v1176_v47  ;;  %v684_v14 = vunpack.c.0.s8 %v426_v20  ;;  %v690_v31 = vunpack.c.1.s8 %v426_v20  ;;  %v960_v45 = vcvt.s32.f32 %v576_v30 }
 0x191   :  { %v966_v33 = vcvt.s32.f32 %v582_v32  ;;  %v780_v37 = vunpack.c.0.s8 %v450_v15  ;;  %v786_v3 = vunpack.c.1.s8 %v450_v15  ;;  %v1242_v23 = vpack.c.bf16 %v870_v56, %v864_v55  ;;  %v463_v56 = vld [vmem:[#allocation5 + $0x2f8] sm:$0xff] }
 0x192   :  { %1662 = vmatpush.bf16.msra.mxu0 %v1350_v24  ;;  %1675 = vmatpush.bf16.msra.mxu1 %v1398_v48  ;;  %v1068_v52 = vcvt.s32.f32 %v684_v14  ;;  %v1074_v62 = vcvt.s32.f32 %v690_v31  ;;  %v468_v35 = vunpack.c.0.s8 %v372_v12  ;;  %v474_v51 = vunpack.c.1.s8 %v372_v12  ;;  %v439_v24 = vld [vmem:[#allocation5 + $0x238] sm:$0xff] }
 0x193   :  { %v1290_v21 = vpack.c.bf16 %v966_v33, %v960_v45  ;;  %v1164_v16 = vcvt.s32.f32 %v780_v37  ;;  %v1170_v9 = vcvt.s32.f32 %v786_v3  ;;  %v564_v58 = vunpack.c.0.s8 %v396_v1  ;;  %v385_v37 = vld [vmem:[#allocation5 + $0x88] sm:$0xff] }
 0x194   :  { %1638 = vmatpush.bf16.msrb.mxu2 %v1242_v23  ;;  %v1344_v53 = vpack.c.bf16 %v1074_v62, %v1068_v52  ;;  %v852_v0 = vcvt.s32.f32 %v468_v35  ;;  %v570_v10 = vunpack.c.1.s8 %v396_v1  ;;  %v858_v25 = vcvt.s32.f32 %v474_v51 }
 0x195   :  { %1651 = vmatpush.bf16.msrb.mxu3 %v1290_v21  ;;  %v1392_v39 = vpack.c.bf16 %v1170_v9, %v1164_v16  ;;  %v553_v8 = vunpack.c.2.s8 %v391_v63  ;;  %v559_v36 = vunpack.c.3.s8 %v391_v63  ;;  %v948_v11 = vcvt.s32.f32 %v564_v58  ;;  %v409_v9 = vld [vmem:[#allocation5 + $0x148] sm:$0xff] }
 0x196   :  { %1663 = vmatpush.bf16.msra.mxu0 %v1344_v53  ;;  %v954_v20 = vcvt.s32.f32 %v570_v10  ;;  %v649_v34 = vunpack.c.2.s8 %v415_v49  ;;  %v655_v13 = vunpack.c.3.s8 %v415_v49  ;;  %v1236_v19 = vpack.c.bf16 %v858_v25, %v852_v0 }
 0x197   :  { %1676 = vmatpush.bf16.msra.mxu1 %v1392_v39  ;;  %v937_v15 = vcvt.s32.f32 %v553_v8  ;;  %v943_v6 = vcvt.s32.f32 %v559_v36  ;;  %v672_v22 = vunpack.c.2.s8 %v420_v50  ;;  %v678_v7 = vunpack.c.3.s8 %v420_v50 }
 0x198   :  { %v1284_v40 = vpack.c.bf16 %v954_v20, %v948_v11  ;;  %v1033_v43 = vcvt.s32.f32 %v649_v34  ;;  %v1039_v12 = vcvt.s32.f32 %v655_v13  ;;  %1639 = vmatpush.bf16.msrb.mxu2 %v1236_v19  ;;  %v768_v2 = vunpack.c.2.s8 %v444_v27 }
 0x199   :  { %v1279_v29 = vpack.c.bf16 %v943_v6, %v937_v15  ;;  %v1056_v57 = vcvt.s32.f32 %v672_v22  ;;  %v774_v4 = vunpack.c.3.s8 %v444_v27  ;;  %v1062_v28 = vcvt.s32.f32 %v678_v7 }
 0x19a   :  { %1652 = vmatpush.bf16.msrb.mxu3 %v1284_v40  ;;  %v1327_v54 = vpack.c.bf16 %v1039_v12, %v1033_v43  ;;  %v541_v61 = vunpack.c.0.s8 %v391_v63  ;;  %v547_v1 = vunpack.c.1.s8 %v391_v63  ;;  %v1152_v60 = vcvt.s32.f32 %v768_v2 }
 0x19b   :  { %v1158_v46 = vcvt.s32.f32 %v774_v4  ;;  %v637_v5 = vunpack.c.0.s8 %v415_v49  ;;  %v643_v26 = vunpack.c.1.s8 %v415_v49  ;;  %v1338_v42 = vpack.c.bf16 %v1062_v28, %v1056_v57  ;;  %1640 = vmatmul.bf16.vlgmr.msrb.gmra.mxu2 %v2617_v44  ;;  %v457_v28 = vld [vmem:[#allocation5 + $0x2c8] sm:$0xff] }
 0x19c   :  { %1684 = vmatpush.bf16.msra.mxu2 %v1279_v29  ;;  %v925_v47 = vcvt.s32.f32 %v541_v61  ;;  %v931_v38 = vcvt.s32.f32 %v547_v1  ;;  %v660_v41 = vunpack.c.0.s8 %v420_v50  ;;  %v666_v48 = vunpack.c.1.s8 %v420_v50  ;;  %v433_v29 = vld [vmem:[#allocation5 + $0x208] sm:$0xff] }
 0x19d   :  { %v1386_v55 = vpack.c.bf16 %v1158_v46, %v1152_v60  ;;  %1653 = vmatmul.bf16.vlgmr.msrb.gmra.mxu3 %v2619_v59  ;;  %v1021_v30 = vcvt.s32.f32 %v637_v5  ;;  %v1027_v32 = vcvt.s32.f32 %v643_v26  ;;  %1664 = vmatpush.bf16.msra.mxu0 %v1338_v42  ;;  %v756_v45 = vunpack.c.0.s8 %v444_v27  ;;  %v379_v5 = vld [vmem:[#allocation5 + $0x58] sm:$0xff] }
 0x19e   :  { %1697 = vmatpush.bf16.msra.mxu3 %v1327_v54  ;;  %v1273_v14 = vpack.c.bf16 %v931_v38, %v925_v47  ;;  %v1044_v31 = vcvt.s32.f32 %v660_v41  ;;  %v762_v33 = vunpack.c.1.s8 %v444_v27  ;;  %v1050_v23 = vcvt.s32.f32 %v666_v48 }
 0x19f   :  { %1677 = vmatpush.bf16.msra.mxu1 %v1386_v55  ;;  %v1321_v3 = vpack.c.bf16 %v1027_v32, %v1021_v30  ;;  %v745_v52 = vunpack.c.2.s8 %v439_v24  ;;  %v751_v62 = vunpack.c.3.s8 %v439_v24  ;;  %v1140_v35 = vcvt.s32.f32 %v756_v45  ;;  %v403_v32 = vld [vmem:[#allocation5 + $0x118] sm:$0xff] }
 0x1a0   :  { %1685 = vmatpush.bf16.msra.mxu2 %v1273_v14  ;;  %v1146_v63 = vcvt.s32.f32 %v762_v33  ;;  %v841_v21 = vunpack.c.2.s8 %v463_v56  ;;  %v847_v16 = vunpack.c.3.s8 %v463_v56  ;;  %v1332_v51 = vpack.c.bf16 %v1050_v23, %v1044_v31 }
 0x1a1   :  { %v1129_v49 = vcvt.s32.f32 %v745_v52  ;;  %v1135_v53 = vcvt.s32.f32 %v751_v62  ;;  %v529_v0 = vunpack.c.2.s8 %v385_v37  ;;  %v535_v39 = vunpack.c.3.s8 %v385_v37 }
 0x1a2   :  { %1698 = vmatpush.bf16.msra.mxu3 %v1321_v3  ;;  %v1380_v58 = vpack.c.bf16 %v1146_v63, %v1140_v35  ;;  %v1225_v10 = vcvt.s32.f32 %v841_v21  ;;  %v1231_v50 = vcvt.s32.f32 %v847_v16  ;;  %1665 = vmatpush.bf16.msra.mxu0 %v1332_v51  ;;  %v625_v36 = vunpack.c.2.s8 %v409_v9 }
 0x1a3   :  { %v1375_v25 = vpack.c.bf16 %v1135_v53, %v1129_v49  ;;  %v913_v8 = vcvt.s32.f32 %v529_v0  ;;  %v631_v11 = vunpack.c.3.s8 %v409_v9  ;;  %v919_v34 = vcvt.s32.f32 %v535_v39 }
 0x1a4   :  { %1678 = vmatpush.bf16.msra.mxu1 %v1380_v58  ;;  %v1423_v20 = vpack.c.bf16 %v1231_v50, %v1225_v10  ;;  %v733_v13 = vunpack.c.0.s8 %v439_v24  ;;  %v739_v27 = vunpack.c.1.s8 %v439_v24  ;;  %v1009_v19 = vcvt.s32.f32 %v625_v36 }
 0x1a5   :  { %v1015_v15 = vcvt.s32.f32 %v631_v11  ;;  %v829_v6 = vunpack.c.0.s8 %v463_v56  ;;  %v835_v22 = vunpack.c.1.s8 %v463_v56  ;;  %1666 = vmatmul.bf16.vlgmr.msra.gmra.mxu0 %v2661_v18  ;;  %v1267_v40 = vpack.c.bf16 %v919_v34, %v913_v8  ;;  %v451_v34 = vld [vmem:[#allocation5 + $0x298] sm:$0xff] }
 0x1a6   :  { %1710 = vmatpush.bf16.msrb.mxu0 %v1375_v25  ;;  %v1117_v43 = vcvt.s32.f32 %v733_v13  ;;  %v1123_v12 = vcvt.s32.f32 %v739_v27  ;;  %v517_v7 = vunpack.c.0.s8 %v385_v37  ;;  %v523_v54 = vunpack.c.1.s8 %v385_v37  ;;  %v427_v25 = vld [vmem:[#allocation5 + $0x1d8] sm:$0xff] }
 0x1a7   :  { %1679 = vmatmul.bf16.vlgmr.msra.gmra.mxu1 %v2663_v17  ;;  %v1315_v57 = vpack.c.bf16 %v1015_v15, %v1009_v19  ;;  %v1213_v2 = vcvt.s32.f32 %v829_v6  ;;  %v1219_v4 = vcvt.s32.f32 %v835_v22  ;;  %1686 = vmatpush.bf16.msra.mxu2 %v1267_v40  ;;  %v613_v60 = vunpack.c.0.s8 %v409_v9  ;;  %v373_v6 = vld [vmem:[#allocation5 + $0x28] sm:$0xff] }
 0x1a8   :  { %1723 = vmatpush.bf16.msrb.mxu1 %v1423_v20  ;;  %v1369_v61 = vpack.c.bf16 %v1123_v12, %v1117_v43  ;;  %v901_v1 = vcvt.s32.f32 %v517_v7  ;;  %v619_v46 = vunpack.c.1.s8 %v409_v9  ;;  %v907_v42 = vcvt.s32.f32 %v523_v54 }
 0x1a9   :  { %1699 = vmatpush.bf16.msra.mxu3 %v1315_v57  ;;  %v1417_v26 = vpack.c.bf16 %v1219_v4, %v1213_v2  ;;  %v721_v47 = vunpack.c.2.s8 %v433_v29  ;;  %v727_v38 = vunpack.c.3.s8 %v433_v29  ;;  %v997_v41 = vcvt.s32.f32 %v613_v60  ;;  %v397_v4 = vld [vmem:[#allocation5 + $0xe8] sm:$0xff] }
 0x1aa   :  { %1711 = vmatpush.bf16.msrb.mxu0 %v1369_v61  ;;  %v1003_v24 = vcvt.s32.f32 %v619_v46  ;;  %v817_v55 = vunpack.c.2.s8 %v457_v28  ;;  %v823_v30 = vunpack.c.3.s8 %v457_v28  ;;  %v1261_v48 = vpack.c.bf16 %v907_v42, %v901_v1 }
 0x1ab   :  { %v1105_v56 = vcvt.s32.f32 %v721_v47  ;;  %v1111_v14 = vcvt.s32.f32 %v727_v38  ;;  %v505_v31 = vunpack.c.2.s8 %v379_v5  ;;  %v511_v3 = vunpack.c.3.s8 %v379_v5 }
 0x1ac   :  { %1724 = vmatpush.bf16.msrb.mxu1 %v1417_v26  ;;  %v1309_v45 = vpack.c.bf16 %v1003_v24, %v997_v41  ;;  %v1201_v33 = vcvt.s32.f32 %v817_v55  ;;  %v1207_v37 = vcvt.s32.f32 %v823_v30  ;;  %1687 = vmatpush.bf16.msra.mxu2 %v1261_v48  ;;  %v601_v62 = vunpack.c.2.s8 %v403_v32 }
 0x1ad   :  { %v1363_v23 = vpack.c.bf16 %v1111_v14, %v1105_v56  ;;  %v889_v52 = vcvt.s32.f32 %v505_v31  ;;  %v607_v35 = vunpack.c.3.s8 %v403_v32  ;;  %v895_v21 = vcvt.s32.f32 %v511_v3 }
 0x1ae   :  { %1700 = vmatpush.bf16.msra.mxu3 %v1309_v45  ;;  %v1411_v63 = vpack.c.bf16 %v1207_v37, %v1201_v33  ;;  %v709_v16 = vunpack.c.0.s8 %v433_v29  ;;  %v715_v9 = vunpack.c.1.s8 %v433_v29  ;;  %v985_v51 = vcvt.s32.f32 %v601_v62 }
 0x1af   :  { %1712 = vmatpush.bf16.msrb.mxu0 %v1363_v23  ;;  %v991_v49 = vcvt.s32.f32 %v607_v35  ;;  %v805_v53 = vunpack.c.0.s8 %v457_v28  ;;  %v811_v0 = vunpack.c.1.s8 %v457_v28  ;;  %v1255_v58 = vpack.c.bf16 %v895_v21, %v889_v52  ;;  %v1791_v23 = vld [vmem:[#allocation7 + $0x18] sm:$0xff]  ;;  %v421_v21 = vld [vmem:[#allocation5 + $0x1a8] sm:$0xff] }
 0x1b0   :  { %1725 = vmatpush.bf16.msrb.mxu1 %v1411_v63  ;;  %v1093_v10 = vcvt.s32.f32 %v709_v16  ;;  %v1099_v50 = vcvt.s32.f32 %v715_v9  ;;  %v493_v39 = vunpack.c.0.s8 %v379_v5  ;;  %v499_v20 = vunpack.c.1.s8 %v379_v5 }
 0x1b1   :  { %v1303_v8 = vpack.c.bf16 %v991_v49, %v985_v51  ;;  %v1189_v36 = vcvt.s32.f32 %v805_v53  ;;  %v1195_v11 = vcvt.s32.f32 %v811_v0  ;;  %1688 = vmatpush.bf16.msra.mxu2 %v1255_v58  ;;  %v589_v19 = vunpack.c.0.s8 %v403_v32  ;;  %v445_v53 = vld [vmem:[#allocation5 + $0x268] sm:$0xff] }
 0x1b2   :  { %v1357_v13 = vpack.c.bf16 %v1099_v50, %v1093_v10  ;;  %v877_v27 = vcvt.s32.f32 %v493_v39  ;;  %v595_v15 = vunpack.c.1.s8 %v403_v32  ;;  %v883_v40 = vcvt.s32.f32 %v499_v20 }
 0x1b3   :  { %1701 = vmatpush.bf16.msra.mxu3 %v1303_v8  ;;  %v1405_v22 = vpack.c.bf16 %v1195_v11, %v1189_v36  ;;  %v697_v43 = vunpack.c.2.s8 %v427_v25  ;;  %v703_v12 = vunpack.c.3.s8 %v427_v25  ;;  %v973_v7 = vcvt.s32.f32 %v589_v19 }
 0x1b4   :  { %1713 = vmatpush.bf16.msrb.mxu0 %v1357_v13  ;;  %v979_v29 = vcvt.s32.f32 %v595_v15  ;;  %v793_v57 = vunpack.c.2.s8 %v451_v34  ;;  %v799_v2 = vunpack.c.3.s8 %v451_v34  ;;  %v1249_v54 = vpack.c.bf16 %v883_v40, %v877_v27 }
 0x1b5   :  { %1726 = vmatpush.bf16.msrb.mxu1 %v1405_v22  ;;  %v1081_v28 = vcvt.s32.f32 %v697_v43  ;;  %v1087_v61 = vcvt.s32.f32 %v703_v12  ;;  %v481_v1 = vunpack.c.2.s8 %v373_v6  ;;  %v487_v26 = vunpack.c.3.s8 %v373_v6 }
 0x1b6   :  { %v1297_v60 = vpack.c.bf16 %v979_v29, %v973_v7  ;;  %v1177_v46 = vcvt.s32.f32 %v793_v57  ;;  %v1183_v5 = vcvt.s32.f32 %v799_v2  ;;  %1689 = vmatpush.bf16.msra.mxu2 %v1249_v54  ;;  %v577_v38 = vunpack.c.2.s8 %v397_v4 }
 0x1b7   :  { %v1351_v42 = vpack.c.bf16 %v1087_v61, %v1081_v28  ;;  %v865_v47 = vcvt.s32.f32 %v481_v1  ;;  %v583_v41 = vunpack.c.3.s8 %v397_v4  ;;  %v871_v55 = vcvt.s32.f32 %v487_v26 }
 0x1b8   :  { %1702 = vmatpush.bf16.msra.mxu3 %v1297_v60  ;;  %v1399_v24 = vpack.c.bf16 %v1183_v5, %v1177_v46  ;;  %v685_v30 = vunpack.c.0.s8 %v427_v25  ;;  %v691_v32 = vunpack.c.1.s8 %v427_v25  ;;  %v961_v48 = vcvt.s32.f32 %v577_v38 }
 0x1b9   :  { %1714 = vmatpush.bf16.msrb.mxu0 %v1351_v42  ;;  %v967_v56 = vcvt.s32.f32 %v583_v41  ;;  %v781_v14 = vunpack.c.0.s8 %v451_v34  ;;  %v787_v31 = vunpack.c.1.s8 %v451_v34  ;;  %v1243_v45 = vpack.c.bf16 %v871_v55, %v865_v47 }
 0x1ba   :  { %1727 = vmatpush.bf16.msrb.mxu1 %v1399_v24  ;;  %v1069_v33 = vcvt.s32.f32 %v685_v30  ;;  %v1075_v37 = vcvt.s32.f32 %v691_v32  ;;  %v469_v3 = vunpack.c.0.s8 %v373_v6  ;;  %v475_v63 = vunpack.c.1.s8 %v373_v6  ;;  %v2924_v24 = vld [vmem:[%s2965_s6] sm:$0x3f] }
 0x1bb   :  { %v1291_v52 = vpack.c.bf16 %v967_v56, %v961_v48  ;;  %v1165_v62 = vcvt.s32.f32 %v781_v14  ;;  %v1171_v35 = vcvt.s32.f32 %v787_v31  ;;  %1690 = vmatpush.bf16.msra.mxu2 %v1243_v45  ;;  %v565_v51 = vunpack.c.0.s8 %v397_v4  ;;  %v2912_v0 = vpop.f32.mrf.mxu2  ;;  %v2914_v58 = vpop.f32.mrf.mxu3  ;;  %v1795_v31 = vld [vmem:[#allocation7 + $0x38] sm:$0xff] }
 0x1bc   :  { %v1345_v16 = vpack.c.bf16 %v1075_v37, %v1069_v33  ;;  %v853_v9 = vcvt.s32.f32 %v469_v3  ;;  %v571_v49 = vunpack.c.1.s8 %v397_v4  ;;  %v859_v50 = vcvt.s32.f32 %v475_v63  ;;  %v2916_v8 = vpop.f32.mrf.mxu0  ;;  %v2918_v36 = vpop.f32.mrf.mxu1  ;;  %v1790_v4 = vld [vmem:[#allocation7 + $0x10] sm:$0xff] }
 0x1bd   :  { %1703 = vmatpush.bf16.msra.mxu3 %v1291_v52  ;;  %v1393_v10 = vpack.c.bf16 %v1171_v35, %v1165_v62  ;;  %v1826_v39 = vunpack.c.2.s8 %v1791_v23  ;;  %v1827_v25 = vunpack.c.3.s8 %v1791_v23  ;;  %v949_v11 = vcvt.s32.f32 %v565_v51  ;;  %v1789_v62 = vld [vmem:[#allocation7 + $0x8] sm:$0xff] }
 0x1be   :  { %1715 = vmatpush.bf16.msrb.mxu0 %v1345_v16  ;;  %v955_v20 = vcvt.s32.f32 %v571_v49  ;;  %v673_v34 = vunpack.c.2.s8 %v421_v21  ;;  %v679_v13 = vunpack.c.3.s8 %v421_v21  ;;  %v1237_v27 = vpack.c.bf16 %v859_v50, %v853_v9 }
 0x1bf   :  { %1728 = vmatpush.bf16.msrb.mxu1 %v1393_v10  ;;  %v1922_v19 = vcvt.s32.f32 %v1826_v39  ;;  %v1923_v15 = vcvt.s32.f32 %v1827_v25  ;;  %v769_v6 = vunpack.c.2.s8 %v445_v53  ;;  %v775_v12 = vunpack.c.3.s8 %v445_v53 }
 0x1c0   :  { %v1285_v22 = vpack.c.bf16 %v955_v20, %v949_v11  ;;  %v1057_v40 = vcvt.s32.f32 %v673_v34  ;;  %v1063_v43 = vcvt.s32.f32 %v679_v13  ;;  %1691 = vmatpush.bf16.msra.mxu2 %v1237_v27  ;;  %v1824_v57 = vunpack.c.0.s8 %v1791_v23  ;;  %v1794_v13 = vld [vmem:[#allocation7 + $0x30] sm:$0xff] }
 0x1c1   :  { %v2011_v7 = vpack.c.bf16 %v1923_v15, %v1922_v19  ;;  %v1153_v29 = vcvt.s32.f32 %v769_v6  ;;  %v1825_v2 = vunpack.c.1.s8 %v1791_v23  ;;  %v1159_v28 = vcvt.s32.f32 %v775_v12 }
 0x1c2   :  { %1704 = vmatpush.bf16.msra.mxu3 %v1285_v22  ;;  %v1339_v54 = vpack.c.bf16 %v1063_v43, %v1057_v40  ;;  %v661_v61 = vunpack.c.0.s8 %v421_v21  ;;  %v667_v1 = vunpack.c.1.s8 %v421_v21  ;;  %v1920_v60 = vcvt.s32.f32 %v1824_v57  ;;  %v1788_v40 = vld [vmem:[#allocation7] sm:$0xff] }
 0x1c3   :  { %v1921_v46 = vcvt.s32.f32 %v1825_v2  ;;  %v757_v5 = vunpack.c.0.s8 %v445_v53  ;;  %v763_v26 = vunpack.c.1.s8 %v445_v53  ;;  %v1387_v42 = vpack.c.bf16 %v1159_v28, %v1153_v29  ;;  %1692 = vmatmul.bf16.vlgmr.msra.gmra.mxu2 %v2617_v44  ;;  %v1435_v55 = vpop.f32.mrf.mxu2  ;;  %v1448_v30 = vpop.f32.mrf.mxu3  ;;  %v2930_v44 = vld [vmem:[%s2966_s7] sm:$0x3f] }
 0x1c4   :  { %2052 = vmatpush.bf16.msrb.mxu2 %v2011_v7  ;;  %1716 = vmatpush.bf16.msrb.mxu0 %v1339_v54  ;;  %v1045_v47 = vcvt.s32.f32 %v661_v61  ;;  %v1051_v38 = vcvt.s32.f32 %v667_v1  ;;  %v1822_v41 = vunpack.c.2.s8 %v1790_v4  ;;  %v1823_v14 = vunpack.c.3.s8 %v1790_v4  ;;  %v1461_v45 = vpop.f32.mrf.mxu0  ;;  %v1474_v33 = vpop.f32.mrf.mxu1 }
 0x1c5   :  { %1705 = vmatmul.bf16.vlgmr.msra.gmra.mxu3 %v2619_v59  ;;  %v2010_v32 = vpack.c.bf16 %v1921_v46, %v1920_v60  ;;  %v1141_v48 = vcvt.s32.f32 %v757_v5  ;;  %v1147_v56 = vcvt.s32.f32 %v763_v26  ;;  %1729 = vmatpush.bf16.msrb.mxu1 %v1387_v42  ;;  %v1820_v23 = vunpack.c.0.s8 %v1790_v4  ;;  %v1799_v33 = vld [vmem:[#allocation7 + $0x58] sm:$0xff] }
 0x1c6   :  { %v1333_v37 = vpack.c.bf16 %v1051_v38, %v1045_v47  ;;  %v1918_v3 = vcvt.s32.f32 %v1822_v41  ;;  %v1821_v52 = vunpack.c.1.s8 %v1790_v4  ;;  %v1919_v35 = vcvt.s32.f32 %v1823_v14 }
 0x1c7   :  { %v1381_v59 = vpack.c.bf16 %v1147_v56, %v1141_v48  ;;  %v1447_v63 = vadd.f32 %v2914_v58, %v2912_v0  ;;  %v1738_v21 = vperm.slane %v2924_v24, 0  ;;  %v1916_v16 = vcvt.s32.f32 %v1820_v23  ;;  %v1793_v48 = vld [vmem:[#allocation7 + $0x28] sm:$0xff] }
 0x1c8   :  { %2053 = vmatpush.bf16.msrb.mxu2 %v2010_v32  ;;  %1717 = vmatpush.bf16.msrb.mxu0 %v1333_v37  ;;  %v1917_v9 = vcvt.s32.f32 %v1821_v52  ;;  %v1758_v51 = vperm.slane %v2930_v44, 0  ;;  %v1842_v49 = vunpack.c.2.s8 %v1795_v31  ;;  %v2009_v53 = vpack.c.bf16 %v1919_v35, %v1918_v3 }
 0x1c9   :  { %v1460_v10 = vadd.f32 %v2916_v8, %v1447_v63  ;;  %v1843_v50 = vunpack.c.3.s8 %v1795_v31  ;;  %v1818_v39 = vunpack.c.2.s8 %v1789_v62  ;;  %1730 = vmatpush.bf16.msrb.mxu1 %v1381_v59  ;;  %v1819_v20 = vunpack.c.3.s8 %v1789_v62 }
 0x1ca   :  { %v2008_v25 = vpack.c.bf16 %v1917_v9, %v1916_v16  ;;  %v1938_v11 = vcvt.s32.f32 %v1842_v49  ;;  %v1840_v34 = vunpack.c.0.s8 %v1795_v31  ;;  %v1841_v19 = vunpack.c.1.s8 %v1795_v31 }
 0x1cb   :  { %1718 = vmatmul.bf16.vlgmr.msrb.gmra.mxu0 %v2661_v18  ;;  %v1473_v0 = vadd.f32 %v2918_v36, %v1460_v10  ;;  %v1939_v58 = vcvt.s32.f32 %v1843_v50  ;;  %v1914_v27 = vcvt.s32.f32 %v1818_v39  ;;  %v1915_v15 = vcvt.s32.f32 %v1819_v20  ;;  %v1485_v57 = vpop.f32.mrf.mxu2 }
 0x1cc   :  { %2054 = vmatpush.bf16.msrb.mxu2 %v2009_v53  ;;  %v1936_v6 = vcvt.s32.f32 %v1840_v34  ;;  %v1816_v22 = vunpack.c.0.s8 %v1789_v62  ;;  %v1817_v8 = vunpack.c.1.s8 %v1789_v62  ;;  %1731 = vmatmul.bf16.vlgmr.msrb.gmra.mxu1 %v2663_v17  ;;  %v1937_v7 = vcvt.s32.f32 %v1841_v19  ;;  %v1498_v2 = vpop.f32.mrf.mxu3  ;;  %v1798_v19 = vld [vmem:[#allocation7 + $0x50] sm:$0xff] }
 0x1cd   :  { %v1750_v43 = vmul.f32 %v1738_v21, %v1473_v0  ;;  %v2019_v12 = vpack.c.bf16 %v1939_v58, %v1938_v11  ;;  %v1838_v29 = vunpack.c.2.s8 %v1794_v13  ;;  %v2007_v18 = vpack.c.bf16 %v1915_v15, %v1914_v27  ;;  %v1511_v36 = vpop.f32.mrf.mxu0  ;;  %v1524_v28 = vpop.f32.mrf.mxu1  ;;  %v1792_v27 = vld [vmem:[#allocation7 + $0x20] sm:$0xff] }
 0x1ce   :  { %v1912_v4 = vcvt.s32.f32 %v1816_v22  ;;  %v1839_v54 = vunpack.c.3.s8 %v1794_v13  ;;  %v2018_v61 = vpack.c.bf16 %v1937_v7, %v1936_v6  ;;  %v1913_v1 = vcvt.s32.f32 %v1817_v8 }
 0x1cf   :  { %2065 = vmatpush.bf16.msrb.mxu3 %v2019_v12  ;;  %v1934_v60 = vcvt.s32.f32 %v1838_v29  ;;  %v1814_v46 = vunpack.c.2.s8 %v1788_v40  ;;  %v1770_v5 = vadd.f32 %v1758_v51, %v1750_v43  ;;  %v1815_v17 = vunpack.c.3.s8 %v1788_v40 }
 0x1d0   :  { %2055 = vmatpush.bf16.msrb.mxu2 %v2008_v25  ;;  %v1935_v26 = vcvt.s32.f32 %v1839_v54  ;;  %v1836_v42 = vunpack.c.0.s8 %v1794_v13  ;;  %v1837_v38 = vunpack.c.1.s8 %v1794_v13  ;;  %v1812_v41 = vunpack.c.0.s8 %v1788_v40 }
 0x1d1   :  { %v1910_v47 = vcvt.s32.f32 %v1814_v46  ;;  %v1911_v55 = vcvt.s32.f32 %v1815_v17  ;;  %v1813_v32 = vunpack.c.1.s8 %v1788_v40  ;;  %v2006_v56 = vpack.c.bf16 %v1913_v1, %v1912_v4 }
 0x1d2   :  { %v1932_v30 = vcvt.s32.f32 %v1836_v42  ;;  %v2017_v14 = vpack.c.bf16 %v1935_v26, %v1934_v60  ;;  %v1933_v31 = vcvt.s32.f32 %v1837_v38  ;;  %v1499_v45 = vadd.f32 %v1498_v2, %v1485_v57 }
 0x1d3   :  { %2066 = vmatpush.bf16.msrb.mxu3 %v2018_v61  ;;  %v1776_v37 = vmax.f32 %v1770_v5, 0.0  ;;  %v2005_v3 = vpack.c.bf16 %v1911_v55, %v1910_v47  ;;  %v1908_v23 = vcvt.s32.f32 %v1812_v41  ;;  %v1909_v52 = vcvt.s32.f32 %v1813_v32  ;;  %v1487_v21 = vpop.f32.mrf.mxu2  ;;  %v1797_v41 = vld [vmem:[#allocation7 + $0x48] sm:$0xff] }
 0x1d4   :  { %2056 = vmatpush.bf16.msrb.mxu2 %v2007_v18  ;;  %v1512_v62 = vadd.f32 %v1511_v36, %v1499_v45  ;;  %v1739_v59 = vperm.slane %v2924_v24, 1  ;;  %v1834_v35 = vunpack.c.2.s8 %v1793_v48  ;;  %v1835_v63 = vunpack.c.3.s8 %v1793_v48  ;;  %v1500_v16 = vpop.f32.mrf.mxu3  ;;  %v1796_v21 = vld [vmem:[#allocation7 + $0x40] sm:$0xff] }
 0x1d5   :  { %v2016_v9 = vpack.c.bf16 %v1933_v31, %v1932_v30  ;;  %v1858_v51 = vunpack.c.2.s8 %v1799_v33  ;;  %v1859_v49 = vunpack.c.3.s8 %v1799_v33  ;;  %v1832_v53 = vunpack.c.0.s8 %v1793_v48  ;;  %v1513_v10 = vpop.f32.mrf.mxu0  ;;  %v1526_v50 = vpop.f32.mrf.mxu1  ;;  %v1803_v16 = vld [vmem:[#allocation7 + $0x78] sm:$0xff] }
 0x1d6   :  { %v1525_v39 = vadd.f32 %v1524_v28, %v1512_v62  ;;  %v1930_v25 = vcvt.s32.f32 %v1834_v35  ;;  %v1931_v11 = vcvt.s32.f32 %v1835_v63  ;;  %v1833_v20 = vunpack.c.1.s8 %v1793_v48 }
 0x1d7   :  { %2067 = vmatpush.bf16.msrb.mxu3 %v2017_v14  ;;  %v1759_v34 = vperm.slane %v2930_v44, 1  ;;  %v1954_v13 = vcvt.s32.f32 %v1858_v51  ;;  %v1955_v0 = vcvt.s32.f32 %v1859_v49  ;;  %v1856_v58 = vunpack.c.0.s8 %v1799_v33 }
 0x1d8   :  { %2057 = vmatpush.bf16.msrb.mxu2 %v2006_v56  ;;  %v1751_v15 = vmul.f32 %v1739_v59, %v1525_v39  ;;  %v1928_v6 = vcvt.s32.f32 %v1832_v53  ;;  %v1929_v22 = vcvt.s32.f32 %v1833_v20  ;;  %v1857_v8 = vunpack.c.1.s8 %v1799_v33 }
 0x1d9   :  { %v2004_v40 = vpack.c.bf16 %v1909_v52, %v1908_v23  ;;  %v2015_v43 = vpack.c.bf16 %v1931_v11, %v1930_v25  ;;  %v2027_v12 = vpack.c.bf16 %v1955_v0, %v1954_v13  ;;  %v1952_v7 = vcvt.s32.f32 %v1856_v58 }
 0x1da   :  { %v1953_v29 = vcvt.s32.f32 %v1857_v8  ;;  %v1830_v57 = vunpack.c.2.s8 %v1792_v27  ;;  %v1831_v2 = vunpack.c.3.s8 %v1792_v27  ;;  %v1854_v18 = vunpack.c.2.s8 %v1798_v19 }
 0x1db   :  { %2068 = vmatpush.bf16.msrb.mxu3 %v2016_v9  ;;  %v1782_v4 = vpack.c.bf16 %v1776_v37, %v1776_v37  ;;  %2078 = vmatpush.bf16.msra.mxu0 %v2027_v12  ;;  %v1855_v54 = vunpack.c.3.s8 %v1798_v19  ;;  %v1771_v36 = vadd.f32 %v1759_v34, %v1751_v15  ;;  %v2014_v28 = vpack.c.bf16 %v1929_v22, %v1928_v6 }
 0x1dc   :  { %2058 = vmatpush.bf16.msrb.mxu2 %v2005_v3  ;;  %v2026_v61 = vpack.c.bf16 %v1953_v29, %v1952_v7  ;;  %v1950_v1 = vcvt.s32.f32 %v1854_v18  ;;  %v1828_v26 = vunpack.c.0.s8 %v1792_v27  ;;  %v1829_v17 = vunpack.c.1.s8 %v1792_v27  ;;  %v1802_v27 = vld [vmem:[#allocation7 + $0x70] sm:$0xff] }
 0x1dd   :  { %v1951_v5 = vcvt.s32.f32 %v1855_v54  ;;  %v1852_v42 = vunpack.c.0.s8 %v1798_v19  ;;  %v1926_v55 = vcvt.s32.f32 %v1830_v57  ;;  %v1927_v30 = vcvt.s32.f32 %v1831_v2 }
 0x1de   :  { %v1537_v60 = vpop.f32.mrf.mxu2  ;;  %v1550_v46 = vpop.f32.mrf.mxu3  ;;  %v1853_v32 = vunpack.c.1.s8 %v1798_v19  ;;  %v1777_v31 = vmax.f32 %v1771_v36, 0.0  ;;  %v1850_v37 = vunpack.c.2.s8 %v1797_v41  ;;  %v1924_v3 = vcvt.s32.f32 %v1828_v26 }
 0x1df   :  { %v1563_v47 = vpop.f32.mrf.mxu0  ;;  %v1576_v38 = vpop.f32.mrf.mxu1  ;;  %2069 = vmatpush.bf16.msrb.mxu3 %v2015_v43  ;;  %v1551_v48 = vadd.f32 %v1550_v46, %v1537_v60  ;;  %2079 = vmatpush.bf16.msra.mxu0 %v2026_v61  ;;  %v2025_v56 = vpack.c.bf16 %v1951_v5, %v1950_v1  ;;  %v1948_v14 = vcvt.s32.f32 %v1852_v42  ;;  %v1925_v23 = vcvt.s32.f32 %v1829_v17  ;;  %v1801_v42 = vld [vmem:[#allocation7 + $0x68] sm:$0xff] }
 0x1e0   :  { %2059 = vmatpush.bf16.msrb.mxu2 %v2004_v40  ;;  %v1949_v45 = vcvt.s32.f32 %v1853_v32  ;;  %v1851_v52 = vunpack.c.3.s8 %v1797_v41  ;;  %v2013_v62 = vpack.c.bf16 %v1927_v30, %v1926_v55  ;;  %v1946_v59 = vcvt.s32.f32 %v1850_v37  ;;  %v1807_v55 = vld [vmem:[#allocation7 + $0x98] sm:$0xff] }
 0x1e1   :  { %v1564_v33 = vadd.f32 %v1563_v47, %v1551_v48  ;;  %v1848_v35 = vunpack.c.0.s8 %v1797_v41  ;;  %v1849_v63 = vunpack.c.1.s8 %v1797_v41  ;;  %v1783_v49 = vpack.c.bf16 %v1777_v31, %v1777_v31 }
 0x1e2   :  { %v2024_v9 = vpack.c.bf16 %v1949_v45, %v1948_v14  ;;  %v1947_v51 = vcvt.s32.f32 %v1851_v52  ;;  %v1740_v10 = vperm.slane %v2924_v24, 2  ;;  %v1760_v50 = vperm.slane %v2930_v44, 2  ;;  %v1806_v52 = vld [vmem:[#allocation7 + $0x90] sm:$0xff] }
 0x1e3   :  { %2060 = vmatmul.bf16.vlgmr.msrb.gmra.mxu2 %v1782_v4  ;;  %2070 = vmatpush.bf16.msrb.mxu3 %v2014_v28  ;;  %v1577_v53 = vadd.f32 %v1576_v38, %v1564_v33  ;;  %v2012_v11 = vpack.c.bf16 %v1925_v23, %v1924_v3  ;;  %v1846_v13 = vunpack.c.2.s8 %v1796_v21  ;;  %v1874_v0 = vunpack.c.2.s8 %v1803_v16 }
 0x1e4   :  { %2080 = vmatpush.bf16.msra.mxu0 %v2025_v56  ;;  %v1875_v58 = vunpack.c.3.s8 %v1803_v16  ;;  %v2023_v19 = vpack.c.bf16 %v1947_v51, %v1946_v59  ;;  %v1944_v15 = vcvt.s32.f32 %v1848_v35  ;;  %v1945_v6 = vcvt.s32.f32 %v1849_v63  ;;  %v1800_v51 = vld [vmem:[#allocation7 + $0x60] sm:$0xff] }
 0x1e5   :  { %v1847_v22 = vunpack.c.3.s8 %v1796_v21  ;;  %v1970_v8 = vcvt.s32.f32 %v1874_v0  ;;  %v1872_v43 = vunpack.c.0.s8 %v1803_v16  ;;  %v1873_v12 = vunpack.c.1.s8 %v1803_v16 }
 0x1e6   :  { %v1539_v39 = vpop.f32.mrf.mxu2  ;;  %v1552_v25 = vpop.f32.mrf.mxu3  ;;  %v1971_v40 = vcvt.s32.f32 %v1875_v58  ;;  %v1752_v7 = vmul.f32 %v1740_v10, %v1577_v53  ;;  %v1844_v29 = vunpack.c.0.s8 %v1796_v21  ;;  %v1870_v57 = vunpack.c.2.s8 %v1802_v27 }
 0x1e7   :  { %v1565_v20 = vpop.f32.mrf.mxu0  ;;  %v1578_v34 = vpop.f32.mrf.mxu1  ;;  %2071 = vmatpush.bf16.msrb.mxu3 %v2013_v62  ;;  %v1871_v2 = vunpack.c.3.s8 %v1802_v27  ;;  %v1845_v18 = vunpack.c.1.s8 %v1796_v21  ;;  %v1968_v54 = vcvt.s32.f32 %v1872_v43  ;;  %v1969_v36 = vcvt.s32.f32 %v1873_v12 }
 0x1e8   :  { %2081 = vmatpush.bf16.msra.mxu0 %v2024_v9  ;;  %v2035_v4 = vpack.c.bf16 %v1971_v40, %v1970_v8  ;;  %v2022_v28 = vpack.c.bf16 %v1945_v6, %v1944_v15  ;;  %v1942_v61 = vcvt.s32.f32 %v1846_v13  ;;  %v1943_v1 = vcvt.s32.f32 %v1847_v22 }
 0x1e9   :  { %v1868_v60 = vunpack.c.0.s8 %v1802_v27  ;;  %v2034_v46 = vpack.c.bf16 %v1969_v36, %v1968_v54  ;;  %v1966_v5 = vcvt.s32.f32 %v1870_v57  ;;  %v1967_v26 = vcvt.s32.f32 %v1871_v2 }
 0x1ea   :  { %2091 = vmatpush.bf16.msra.mxu1 %v2035_v4  ;;  %v1869_v17 = vunpack.c.1.s8 %v1802_v27  ;;  %v1772_v47 = vadd.f32 %v1760_v50, %v1752_v7  ;;  %v1940_v38 = vcvt.s32.f32 %v1844_v29  ;;  %v1941_v41 = vcvt.s32.f32 %v1845_v18 }
 0x1eb   :  { %2072 = vmatpush.bf16.msrb.mxu3 %v2012_v11  ;;  %v2021_v30 = vpack.c.bf16 %v1943_v1, %v1942_v61  ;;  %v1964_v32 = vcvt.s32.f32 %v1868_v60  ;;  %v2033_v48 = vpack.c.bf16 %v1967_v26, %v1966_v5  ;;  %v1866_v14 = vunpack.c.2.s8 %v1801_v42 }
 0x1ec   :  { %2082 = vmatpush.bf16.msra.mxu0 %v2023_v19  ;;  %v1965_v56 = vcvt.s32.f32 %v1869_v17  ;;  %v1867_v31 = vunpack.c.3.s8 %v1801_v42  ;;  %v1890_v45 = vunpack.c.2.s8 %v1807_v55  ;;  %v1778_v33 = vmax.f32 %v1772_v47, 0.0 }
 0x1ed   :  { %v2020_v37 = vpack.c.bf16 %v1941_v41, %v1940_v38  ;;  %v1891_v3 = vunpack.c.3.s8 %v1807_v55  ;;  %v1888_v23 = vunpack.c.0.s8 %v1807_v55  ;;  %v1864_v62 = vunpack.c.0.s8 %v1801_v42 }
 0x1ee   :  { %2073 = vmatmul.bf16.vlgmr.msrb.gmra.mxu3 %v1783_v49  ;;  %2092 = vmatpush.bf16.msra.mxu1 %v2034_v46  ;;  %v1865_v59 = vunpack.c.1.s8 %v1801_v42  ;;  %v1986_v35 = vcvt.s32.f32 %v1890_v45  ;;  %v1889_v63 = vunpack.c.1.s8 %v1807_v55  ;;  %v2032_v21 = vpack.c.bf16 %v1965_v56, %v1964_v32 }
 0x1ef   :  { %v1962_v16 = vcvt.s32.f32 %v1866_v14  ;;  %v1963_v9 = vcvt.s32.f32 %v1867_v31  ;;  %v1987_v49 = vcvt.s32.f32 %v1891_v3  ;;  %v1984_v53 = vcvt.s32.f32 %v1888_v23  ;;  %v1805_v14 = vld [vmem:[#allocation7 + $0x88] sm:$0xff] }
 0x1f0   :  { %2083 = vmatpush.bf16.msra.mxu0 %v2022_v28  ;;  %v1985_v10 = vcvt.s32.f32 %v1889_v63  ;;  %v1886_v50 = vunpack.c.2.s8 %v1806_v52  ;;  %v1887_v39 = vunpack.c.3.s8 %v1806_v52  ;;  %v1784_v11 = vpack.c.bf16 %v1778_v33, %v1778_v33  ;;  %v1804_v63 = vld [vmem:[#allocation7 + $0x80] sm:$0xff] }
 0x1f1   :  { %v2043_v25 = vpack.c.bf16 %v1987_v49, %v1986_v35  ;;  %v1862_v20 = vunpack.c.2.s8 %v1800_v51  ;;  %v1863_v34 = vunpack.c.3.s8 %v1800_v51  ;;  %v2031_v13 = vpack.c.bf16 %v1963_v9, %v1962_v16 }
 0x1f2   :  { %2093 = vmatpush.bf16.msra.mxu1 %v2033_v48  ;;  %v1960_v0 = vcvt.s32.f32 %v1864_v62  ;;  %v1961_v58 = vcvt.s32.f32 %v1865_v59  ;;  %v1884_v27 = vunpack.c.0.s8 %v1806_v52  ;;  %v2042_v19 = vpack.c.bf16 %v1985_v10, %v1984_v53 }
 0x1f3   :  { %2104 = vmatpush.bf16.msra.mxu2 %v2043_v25  ;;  %v1982_v15 = vcvt.s32.f32 %v1886_v50  ;;  %v1983_v6 = vcvt.s32.f32 %v1887_v39  ;;  %v1885_v22 = vunpack.c.1.s8 %v1806_v52  ;;  %v1958_v12 = vcvt.s32.f32 %v1862_v20  ;;  %v1810_v25 = vld [vmem:[#allocation7 + $0xb0] sm:$0xff] }
 0x1f4   :  { %2084 = vmatpush.bf16.msra.mxu0 %v2021_v30  ;;  %v1860_v7 = vunpack.c.0.s8 %v1800_v51  ;;  %v2030_v2 = vpack.c.bf16 %v1961_v58, %v1960_v0  ;;  %v1959_v18 = vcvt.s32.f32 %v1863_v34  ;;  %v1861_v4 = vunpack.c.1.s8 %v1800_v51 }
 0x1f5   :  { %v2041_v54 = vpack.c.bf16 %v1983_v6, %v1982_v15  ;;  %v1980_v36 = vcvt.s32.f32 %v1884_v27  ;;  %v1981_v28 = vcvt.s32.f32 %v1885_v22  ;;  %v1741_v1 = vperm.slane %v2924_v24, 3 }
 0x1f6   :  { %2094 = vmatpush.bf16.msra.mxu1 %v2032_v21  ;;  %v1761_v60 = vperm.slane %v2930_v44, 3  ;;  %v2029_v5 = vpack.c.bf16 %v1959_v18, %v1958_v12  ;;  %v1956_v26 = vcvt.s32.f32 %v1860_v7  ;;  %v1957_v17 = vcvt.s32.f32 %v1861_v4  ;;  %v1811_v21 = vld [vmem:[#allocation7 + $0xb8] sm:$0xff] }
 0x1f7   :  { %2105 = vmatpush.bf16.msra.mxu2 %v2042_v19  ;;  %v2040_v42 = vpack.c.bf16 %v1981_v28, %v1980_v36  ;;  %v1882_v31 = vunpack.c.2.s8 %v1805_v14  ;;  %v1883_v45 = vunpack.c.3.s8 %v1805_v14  ;;  %v1880_v52 = vunpack.c.0.s8 %v1805_v14 }
 0x1f8   :  { %2085 = vmatpush.bf16.msra.mxu0 %v2020_v37  ;;  %v2028_v48 = vpack.c.bf16 %v1957_v17, %v1956_v26  ;;  %v1881_v62 = vunpack.c.1.s8 %v1805_v14  ;;  %v1878_v9 = vunpack.c.2.s8 %v1804_v63  ;;  %v1879_v51 = vunpack.c.3.s8 %v1804_v63 }
 0x1f9   :  { %v1978_v37 = vcvt.s32.f32 %v1882_v31  ;;  %v1979_v3 = vcvt.s32.f32 %v1883_v45  ;;  %v1976_v59 = vcvt.s32.f32 %v1880_v52  ;;  %v1876_v49 = vunpack.c.0.s8 %v1804_v63  ;;  %v1808_v52 = vld [vmem:[#allocation7 + $0xa0] sm:$0xff] }
 0x1fa   :  { %2095 = vmatpush.bf16.msra.mxu1 %v2031_v13  ;;  %v1977_v35 = vcvt.s32.f32 %v1881_v62  ;;  %v1877_v53 = vunpack.c.1.s8 %v1804_v63  ;;  %v1906_v10 = vunpack.c.2.s8 %v1811_v21  ;;  %v1907_v50 = vunpack.c.3.s8 %v1811_v21 }
 0x1fb   :  { %2086 = vmatmul.bf16.vlgmr.msra.gmra.mxu0 %v1784_v11  ;;  %2106 = vmatpush.bf16.msra.mxu2 %v2041_v54  ;;  %v2039_v23 = vpack.c.bf16 %v1979_v3, %v1978_v37  ;;  %v1904_v39 = vunpack.c.0.s8 %v1811_v21  ;;  %v1974_v11 = vcvt.s32.f32 %v1878_v9  ;;  %v1975_v20 = vcvt.s32.f32 %v1879_v51 }
 0x1fc   :  { %v2038_v16 = vpack.c.bf16 %v1977_v35, %v1976_v59  ;;  %v1972_v34 = vcvt.s32.f32 %v1876_v49  ;;  %v1905_v13 = vunpack.c.1.s8 %v1811_v21  ;;  %v1973_v0 = vcvt.s32.f32 %v1877_v53 }
 0x1fd   :  { %v2002_v58 = vcvt.s32.f32 %v1906_v10  ;;  %v2003_v27 = vcvt.s32.f32 %v1907_v50  ;;  %v2000_v19 = vcvt.s32.f32 %v1904_v39  ;;  %v2037_v15 = vpack.c.bf16 %v1975_v20, %v1974_v11 }
 0x1fe   :  { %v1589_v8 = vpop.f32.mrf.mxu2  ;;  %v1602_v40 = vpop.f32.mrf.mxu3  ;;  %2096 = vmatpush.bf16.msra.mxu1 %v2030_v2  ;;  %v2001_v6 = vcvt.s32.f32 %v1905_v13  ;;  %v1902_v22 = vunpack.c.2.s8 %v1810_v25  ;;  %v1900_v12 = vunpack.c.0.s8 %v1810_v25  ;;  %v1901_v2 = vunpack.c.1.s8 %v1810_v25 }
 0x1ff   :  { %v1615_v43 = vpop.f32.mrf.mxu0  ;;  %v1603_v29 = vadd.f32 %v1602_v40, %v1589_v8  ;;  %v1628_v57 = vpop.f32.mrf.mxu1  ;;  %2107 = vmatpush.bf16.msra.mxu2 %v2040_v42  ;;  %v1903_v8 = vunpack.c.3.s8 %v1810_v25  ;;  %v2051_v40 = vpack.c.bf16 %v2003_v27, %v2002_v58  ;;  %v1742_v17 = vperm.slane %v2924_v24, 4 }
 0x200   :  { %v2050_v7 = vpack.c.bf16 %v2001_v6, %v2000_v19  ;;  %v1996_v4 = vcvt.s32.f32 %v1900_v12  ;;  %v1997_v54 = vcvt.s32.f32 %v1901_v2  ;;  %v1894_v63 = vunpack.c.2.s8 %v1808_v52 }
 0x201   :  { %v1616_v61 = vadd.f32 %v1615_v43, %v1603_v29  ;;  %v2036_v43 = vpack.c.bf16 %v1973_v0, %v1972_v34  ;;  %2117 = vmatpush.bf16.msra.mxu3 %v2051_v40  ;;  %v1998_v29 = vcvt.s32.f32 %v1902_v22  ;;  %v1895_v21 = vunpack.c.3.s8 %v1808_v52 }
 0x202   :  { %2097 = vmatpush.bf16.msra.mxu1 %v2029_v5  ;;  %v2048_v36 = vpack.c.bf16 %v1997_v54, %v1996_v4  ;;  %v1990_v9 = vcvt.s32.f32 %v1894_v63  ;;  %v1892_v53 = vunpack.c.0.s8 %v1808_v52  ;;  %v1893_v10 = vunpack.c.1.s8 %v1808_v52 }
 0x203   :  { %v1629_v46 = vadd.f32 %v1628_v57, %v1616_v61  ;;  %2108 = vmatpush.bf16.msra.mxu2 %v2039_v23  ;;  %v1999_v57 = vcvt.s32.f32 %v1903_v8  ;;  %v1991_v51 = vcvt.s32.f32 %v1895_v21  ;;  %v1743_v27 = vperm.slane %v2924_v24, 5 }
 0x204   :  { %v1988_v50 = vcvt.s32.f32 %v1892_v53  ;;  %v1989_v39 = vcvt.s32.f32 %v1893_v10 }
 0x205   :  { %v1753_v47 = vmul.f32 %v1741_v1, %v1629_v46  ;;  %2118 = vmatpush.bf16.msra.mxu3 %v2050_v7  ;;  %v2049_v18 = vpack.c.bf16 %v1999_v57, %v1998_v29  ;;  %v1809_v46 = vld [vmem:[#allocation7 + $0xa8] sm:$0xff]  ;;  %v2045_v49 = vpack.c.bf16 %v1991_v51, %v1990_v9 }
 0x206   :  { %v1591_v38 = vpop.f32.mrf.mxu2  ;;  %v1604_v41 = vpop.f32.mrf.mxu3  ;;  %2098 = vmatpush.bf16.msra.mxu1 %v2028_v48  ;;  %v1898_v42 = vunpack.c.2.s8 %v1809_v46  ;;  %v1896_v31 = vunpack.c.0.s8 %v1809_v46  ;;  %v1897_v45 = vunpack.c.1.s8 %v1809_v46  ;;  %v2044_v25 = vpack.c.bf16 %v1989_v39, %v1988_v50 }
 0x207   :  { %v1617_v55 = vpop.f32.mrf.mxu0  ;;  %v1773_v30 = vadd.f32 %v1761_v60, %v1753_v47  ;;  %v1630_v32 = vpop.f32.mrf.mxu1  ;;  %2109 = vmatpush.bf16.msra.mxu2 %v2038_v16  ;;  %v1899_v47 = vunpack.c.3.s8 %v1809_v46  ;;  %v1762_v41 = vperm.slane %v2930_v44, 4 }
 0x208   :  { %v1994_v55 = vcvt.s32.f32 %v1898_v42  ;;  %v1992_v37 = vcvt.s32.f32 %v1896_v31  ;;  %v1993_v3 = vcvt.s32.f32 %v1897_v45 }
 0x209   :  { %v1779_v56 = vmax.f32 %v1773_v30, 0.0  ;;  %2119 = vmatpush.bf16.msra.mxu3 %v2049_v18  ;;  %v1995_v30 = vcvt.s32.f32 %v1899_v47  ;;  %v2274_v47 = vld [vmem:[%s2969_s10] ss:$0 sm:$0xff] }
 0x20a   :  { %v2046_v35 = vpack.c.bf16 %v1993_v3, %v1992_v37 }
 0x20b   :  { %v1785_v33 = vpack.c.bf16 %v1779_v56, %v1779_v56  ;;  %2110 = vmatpush.bf16.msra.mxu2 %v2037_v15  ;;  %v2047_v14 = vpack.c.bf16 %v1995_v30, %v1994_v55  ;;  %v1763_v15 = vperm.slane %v2930_v44, 5 }
 0x20d   :  { %2099 = vmatmul.bf16.vlgmr.msra.gmra.mxu1 %v1785_v33  ;;  %2120 = vmatpush.bf16.msra.mxu3 %v2048_v36 }
 0x20f   :  { %2111 = vmatpush.bf16.msra.mxu2 %v2036_v43 }
 0x211   :  { %2121 = vmatpush.bf16.msra.mxu3 %v2047_v14 }
 0x215   :  { %2122 = vmatpush.bf16.msra.mxu3 %v2046_v35 }
 0x219   :  { %2123 = vmatpush.bf16.msra.mxu3 %v2045_v49 }
 0x21d   :  { %2124 = vmatpush.bf16.msra.mxu3 %v2044_v25 }
 0x21e   :  { %v1641_v28 = vpop.f32.mrf.mxu2 }
 0x220   :  { %v1654_v61 = vpop.f32.mrf.mxu3 }
 0x221   :  { %v1655_v1 = vadd.f32 %v1654_v61, %v1641_v28 }
 0x222   :  { %v1667_v60 = vpop.f32.mrf.mxu0 }
 0x223   :  { %v1668_v5 = vadd.f32 %v1667_v60, %v1655_v1 }
 0x224   :  { %v1680_v26 = vpop.f32.mrf.mxu1 }
 0x225   :  { %v1681_v38 = vadd.f32 %v1680_v26, %v1668_v5  ;;  %v2273_v26 = vld [vmem:[%s2968_s9] ss:$0 sm:$0xff] }
 0x226   :  { %v1643_v32 = vpop.f32.mrf.mxu2 }
 0x227   :  { %v1754_v48 = vmul.f32 %v1742_v17, %v1681_v38 }
 0x228   :  { %v1656_v56 = vpop.f32.mrf.mxu3 }
 0x229   :  { %v1774_v33 = vadd.f32 %v1762_v41, %v1754_v48 }
 0x22a   :  { %v1669_v23 = vpop.f32.mrf.mxu0 }
 0x22b   :  { %v1780_v62 = vmax.f32 %v1774_v33, 0.0 }
 0x22c   :  { %v1682_v59 = vpop.f32.mrf.mxu1 }
 0x22d   :  { %v1786_v16 = vpack.c.bf16 %v1780_v62, %v1780_v62 }
 0x22f   :  { %2112 = vmatmul.bf16.vlgmr.msra.gmra.mxu2 %v1786_v16 }
 0x246   :  { %v1693_v11 = vpop.f32.mrf.mxu2 }
 0x248   :  { %v1706_v20 = vpop.f32.mrf.mxu3  ;;  %v1719_v34 = vpop.f32.mrf.mxu0 }
 0x249   :  { %v1707_v13 = vadd.f32 %v1706_v20, %v1693_v11  ;;  %v1732_v0 = vpop.f32.mrf.mxu1 }
 0x24b   :  { %v1720_v58 = vadd.f32 %v1719_v34, %v1707_v13 }
 0x24d   :  { %v1733_v19 = vadd.f32 %v1732_v0, %v1720_v58 }
 0x24e   :  { %v1695_v22 = vpop.f32.mrf.mxu2 }
 0x24f   :  { %v1755_v6 = vmul.f32 %v1743_v27, %v1733_v19 }
 0x250   :  { %v1708_v8 = vpop.f32.mrf.mxu3  ;;  %v1721_v40 = vpop.f32.mrf.mxu0 }
 0x251   :  { %v1775_v43 = vadd.f32 %v1763_v15, %v1755_v6  ;;  %v1734_v12 = vpop.f32.mrf.mxu1 }
 0x253   :  { %v1781_v7 = vmax.f32 %v1775_v43, 0.0 }
 0x255   :  { %v1787_v29 = vpack.c.bf16 %v1781_v7, %v1781_v7 }
 0x257   :  { %2125 = vmatmul.bf16.vlgmr.msra.gmra.mxu3 %v1787_v29 }
 0x266   :  { %v2061_v57 = vpop.f32.mrf.mxu2 }
 0x26e   :  { %v2063_v2 = vpop.f32.mrf.mxu2 }
 0x271   :  { %v2074_v18 = vpop.f32.mrf.mxu3 }
 0x272   :  { %v2075_v4 = vadd.f32 %v2074_v18, %v2061_v57 }
 0x278   :  { %v2087_v54 = vpop.f32.mrf.mxu0 }
 0x279   :  { %v2076_v36 = vpop.f32.mrf.mxu3  ;;  %v2088_v28 = vadd.f32 %v2087_v54, %v2075_v4 }
 0x280   :  { %v2089_v24 = vpop.f32.mrf.mxu0 }
 0x28a   :  { %v2100_v61 = vpop.f32.mrf.mxu1 }
 0x28b   :  { %v2101_v1 = vadd.f32 %v2100_v61, %v2088_v28 }
 0x292   :  { %v2102_v44 = vpop.f32.mrf.mxu1 }
 0x2b2   :  { %v2113_v60 = vpop.f32.mrf.mxu2 }
 0x2b3   :  { %v2114_v5 = vadd.f32 %v2113_v60, %v2101_v1 }
 0x2ba   :  { %v2115_v46 = vpop.f32.mrf.mxu2 }
 0x2da   :  { %v2126_v17 = vpop.f32.mrf.mxu3 }
 0x2db   :  { %v2127_v42 = vadd.f32 %v2126_v17, %v2114_v5 }
 0x2dd   :  { %v2134_v38 = vmul.f32 %v2273_v26, %v2127_v42 }
 0x2df   :  { %v2139_v41 = vadd.f32 %v2274_v47, %v2134_v38 }
 0x2e1   :  { %2140 = vst [vmem:[#allocation8] sm:$0x3] %v2139_v41 }
 0x2e2   :  { %v2128_v55 = vpop.f32.mrf.mxu3  ;;  %2151 = dma.vmem_to_hbm [thread:$0]  %s2147_s8, 32, %s2149_s21, [#allocation4]  }
 0x2e3   :  { %2375 = dma.done.wait [#allocation4], 32  }
 0x2e4   :  { %2376 = vsyncadd [#allocation4], 4294967264 }
 0x2e5   :  { %2156 = vsyncpa [#allocation3], 1 }
 0x2e6   :  { %2157 = vsyncpa [#allocation6], 1 }
 0x2e7   :  { %2158 = vsyncpa [#allocation4], 1 }

</bundles_post_ra>
